<compile_context>
chip_gen: v7x
topology: tpu7x:2x2x1
jax: 0.10.0
libtpu: 0.0.40
codegen_flags: <defaults>
</compile_context>

<pallas_src>
import math

import jax
import jax.numpy as jnp
from jax import lax
from jax.experimental import pallas as pl
from jax.experimental.pallas import tpu as pltpu


def _make_kernel(n_heads: int, head_dim: int, d_ff: int, ffn_chunk: int,
                 eps: float = 1e-5):
    """Builds the per-(batch, query-tile) transformer-block kernel."""
    scale = 1.0 / math.sqrt(head_dim)

    def layernorm(v, gamma, beta):
        mu = jnp.mean(v, axis=-1, keepdims=True)
        var = jnp.mean(jnp.square(v - mu), axis=-1, keepdims=True)
        return (v - mu) * lax.rsqrt(var + eps) * gamma + beta

    def kernel(xq_ref, xkv_ref,
               wq_ref, wk_ref, wv_ref, wo_ref, w1_ref, w2_ref,
               bq_ref, bk_ref, bv_ref, bo_ref, b1_ref, b2_ref,
               g1_ref, be1_ref, g2_ref, be2_ref,
               out_ref):
        f32 = jnp.float32
        bf16 = jnp.bfloat16

        xq = xq_ref[0]                    # (TS, D) f32 — query rows of this tile
        xkv = xkv_ref[0]                  # (S,  D) f32 — full sequence for K/V

        # ---- QKV projections: x @ W, weights already (in, out) bf16 ----
        q = jnp.dot(xq.astype(bf16), wq_ref[...],
                    preferred_element_type=f32) + bq_ref[...]
        k = jnp.dot(xkv.astype(bf16), wk_ref[...],
                    preferred_element_type=f32) + bk_ref[...]
        v = jnp.dot(xkv.astype(bf16), wv_ref[...],
                    preferred_element_type=f32) + bv_ref[...]

        # ---- per-head attention; output projection accumulated in place ----
        # TODO(synk): attn_mask not implemented (module default mask=None); for very
        # long S switch to an online-softmax (flash) loop over KV blocks.
        attn = jnp.zeros(q.shape, f32)
        for h in range(n_heads):          # static unroll; H is small
            lo = h * head_dim
            qh = q[:, lo:lo + head_dim].astype(bf16)
            kh = k[:, lo:lo + head_dim].astype(bf16)
            vh = v[:, lo:lo + head_dim].astype(bf16)
            # scores: contract head_dim of both operands (no explicit transpose)
            s = lax.dot_general(qh, kh, (((1,), (1,)), ((), ())),
                                preferred_element_type=f32) * scale   # (TS, S)
            s = s - jnp.max(s, axis=-1, keepdims=True)
            p = jnp.exp(s)
            p = p * pl.reciprocal(jnp.sum(p, axis=-1, keepdims=True), approx=True)
            ctx = jnp.dot(p.astype(bf16), vh,
                          preferred_element_type=f32)                 # (TS, hd)
            # fold the head-concat into the output projection:
            attn = attn + jnp.dot(ctx.astype(bf16), wo_ref[h],
                                  preferred_element_type=f32)         # (TS, D)
        attn = attn + bo_ref[...]

        # ---- residual + LayerNorm 1 (f32) ----
        x1 = layernorm(xq + attn, g1_ref[...], be1_ref[...])
        x1_b = x1.astype(bf16)

        # ---- FFN, accumulated over d_ff chunks (bounds live activation) ----
        ffn = jnp.zeros(x1.shape, f32)
        for c0 in range(0, d_ff, ffn_chunk):
            c1 = c0 + ffn_chunk
            h1 = jnp.dot(x1_b, w1_ref[:, c0:c1],
                         preferred_element_type=f32) + b1_ref[:, c0:c1]
            h1 = jnp.maximum(h1, 0.0)
            ffn = ffn + jnp.dot(h1.astype(bf16), w2_ref[c0:c1, :],
                                preferred_element_type=f32)
        ffn = ffn + b2_ref[...]

        # ---- residual + LayerNorm 2 ----
        out_ref[0] = layernorm(x1 + ffn, g2_ref[...], be2_ref[...])

    return kernel


def transformer_block(x, params, n_heads):
    """x: (B, S, D) float32. params: dict of weights in PyTorch layouts (f32)."""
    B, S, D = x.shape
    head_dim = D // n_heads
    d_ff = params["w1"].shape[0]
    bf16 = jnp.bfloat16

    # query-row tile over the sequence axis
    TS = S if S <= 128 else 128
    num_s = pl.cdiv(S, TS)

    # d_ff chunk for the FFN accumulation (multiple of 128 when possible)
    ffn_chunk = 512 if (d_ff > 512 and d_ff % 512 == 0) else d_ff

    kernel = _make_kernel(n_heads, head_dim, d_ff, ffn_chunk)

    # Pre-transpose once in the wrapper: (in_features, out_features), bf16.
    wq_t = params["wq"].T.astype(bf16)                                 # (D, D)
    wk_t = params["wk"].T.astype(bf16)                                 # (D, D)
    wv_t = params["wv"].T.astype(bf16)                                 # (D, D)
    wo_h = params["wo"].T.astype(bf16).reshape(n_heads, head_dim, D)   # (H, hd, D)
    w1_t = params["w1"].T.astype(bf16)                                 # (D, 4D)
    w2_t = params["w2"].T.astype(bf16)                                 # (4D, D)

    weights = [wq_t, wk_t, wv_t, wo_h, w1_t, w2_t,
               params["bq"], params["bk"], params["bv"], params["bo"],
               params["b1"], params["b2"],
               params["g1"], params["be1"], params["g2"], params["be2"]]

    full = lambda a: pl.BlockSpec(a.shape, lambda b, s: (0,) * a.ndim)

    return pl.pallas_call(
        kernel,
        out_shape=jax.ShapeDtypeStruct((B, S, D), jnp.float32),
        grid=(B, num_s),
        in_specs=[pl.BlockSpec((1, TS, D), lambda b, s: (b, s, 0)),   # query rows
                  pl.BlockSpec((1, S, D), lambda b, s: (b, 0, 0))]    # full seq (K/V)
                 + [full(w) for w in weights],
        out_specs=pl.BlockSpec((1, TS, D), lambda b, s: (b, s, 0)),
        compiler_params=pltpu.CompilerParams(
            dimension_semantics=("parallel", "parallel"),
            vmem_limit_bytes=64 * 1024 * 1024),
    )(x, x, *weights)


def _init_params(key, d_model):
    """Deterministic synthetic parameters (shapes match the PyTorch module)."""
    ks = jax.random.split(key, 8)
    d_ff = 4 * d_model
    std = 1.0 / math.sqrt(d_model)
    return {
        # in-projection (split of the (3D, D) in_proj_weight) + biases
        "wq": jax.random.normal(ks[0], (d_model, d_model), jnp.float32) * std,
        "wk": jax.random.normal(ks[1], (d_model, d_model), jnp.float32) * std,
        "wv": jax.random.normal(ks[2], (d_model, d_model), jnp.float32) * std,
        "bq": jax.random.normal(ks[3], (1, d_model), jnp.float32) * 0.02,
        "bk": jax.random.normal(ks[4], (1, d_model), jnp.float32) * 0.02,
        "bv": jax.random.normal(ks[5], (1, d_model), jnp.float32) * 0.02,
        # out projection
        "wo": jax.random.normal(ks[6], (d_model, d_model), jnp.float32) * std,
        "bo": jnp.zeros((1, d_model), jnp.float32),
        # LayerNorm 1
        "g1": jnp.ones((1, d_model), jnp.float32),
        "be1": jnp.zeros((1, d_model), jnp.float32),
        # FFN
        "w1": jax.random.normal(ks[7], (d_ff, d_model), jnp.float32) * std,
        "b1": jnp.zeros((1, d_ff), jnp.float32),
        "w2": jax.random.normal(jax.random.fold_in(key, 99), (d_model, d_ff),
                                jnp.float32) * (1.0 / math.sqrt(d_ff)),
        "b2": jnp.zeros((1, d_model), jnp.float32),
        # LayerNorm 2
        "g2": jnp.ones((1, d_model), jnp.float32),
        "be2": jnp.zeros((1, d_model), jnp.float32),
    }


def _reference(x, p, n_heads):
    """Pure-JAX reference mirroring the kernel's mixed precision (bf16 matmul
    inputs, f32 accumulation; layernorm/softmax in f32)."""
    bf16, f32 = jnp.bfloat16, jnp.float32
    B, S, D = x.shape
    hd = D // n_heads

    def mm(a, w_t_bf16):
        return jnp.dot(a.astype(bf16), w_t_bf16, preferred_element_type=f32)

    q = mm(x, p["wq"].T.astype(bf16)) + p["bq"]
    k = mm(x, p["wk"].T.astype(bf16)) + p["bk"]
    v = mm(x, p["wv"].T.astype(bf16)) + p["bv"]

    scale = 1.0 / math.sqrt(hd)
    attn = jnp.zeros_like(q)
    for h in range(n_heads):
        lo = h * hd
        qh = q[..., lo:lo + hd].astype(bf16)
        kh = k[..., lo:lo + hd].astype(bf16)
        vh = v[..., lo:lo + hd].astype(bf16)
        s = jnp.einsum("bqd,bkd->bqk", qh, kh,
                       preferred_element_type=f32) * scale
        s = s - jnp.max(s, axis=-1, keepdims=True)
        pm = jnp.exp(s)
        pm = pm / jnp.sum(pm, axis=-1, keepdims=True)
        ch = jnp.einsum("bqk,bkd->bqd", pm.astype(bf16), vh,
                        preferred_element_type=f32)
        attn = attn + mm(ch, p["wo"].T[lo:lo + hd, :].astype(bf16))
    attn = attn + p["bo"]

    def ln(val, g, b):
        mu = jnp.mean(val, axis=-1, keepdims=True)
        var = jnp.mean(jnp.square(val - mu), axis=-1, keepdims=True)
        return (val - mu) * lax.rsqrt(var + 1e-5) * g + b

    x1 = ln(x + attn, p["g1"], p["be1"])
    h1 = jnp.maximum(mm(x1, p["w1"].T.astype(bf16)) + p["b1"], 0.0)
    ffn = mm(h1, p["w2"].T.astype(bf16)) + p["b2"]
    return ln(x1 + ffn, p["g2"], p["be2"])


if __name__ == "__main__":
    B, S, D, H = 2, 8, 32, 4
    key = jax.random.PRNGKey(0)
    kx, kp = jax.random.split(key)
    x = jax.random.normal(kx, (B, S, D), jnp.float32)
    params = _init_params(kp, D)

    out = jax.block_until_ready(transformer_block(x, params, n_heads=H))
    ref = _reference(x, params, H)

    assert out.shape == (B, S, D)
    max_err = float(jnp.max(jnp.abs(out - ref)))
    assert jnp.allclose(out, ref, atol=2e-2, rtol=2e-2), f"mismatch vs reference: {max_err}"
    print("KERNEL_OK")
</pallas_src>

<mosaic_0001>
module attributes {stable_mosaic.version = 11 : i64} {
  func.func @kernel(%arg0: i32, %arg1: i32, %arg2: memref<1x8x32xf32, #tpu.memory_space<vmem>>, %arg3: memref<1x8x32xf32, #tpu.memory_space<vmem>>, %arg4: memref<32x32xbf16, #tpu.memory_space<vmem>>, %arg5: memref<32x32xbf16, #tpu.memory_space<vmem>>, %arg6: memref<32x32xbf16, #tpu.memory_space<vmem>>, %arg7: memref<4x8x32xbf16, #tpu.memory_space<vmem>>, %arg8: memref<32x128xbf16, #tpu.memory_space<vmem>>, %arg9: memref<128x32xbf16, #tpu.memory_space<vmem>>, %arg10: memref<1x32xf32, #tpu.memory_space<vmem>>, %arg11: memref<1x32xf32, #tpu.memory_space<vmem>>, %arg12: memref<1x32xf32, #tpu.memory_space<vmem>>, %arg13: memref<1x32xf32, #tpu.memory_space<vmem>>, %arg14: memref<1x128xf32, #tpu.memory_space<vmem>>, %arg15: memref<1x32xf32, #tpu.memory_space<vmem>>, %arg16: memref<1x32xf32, #tpu.memory_space<vmem>>, %arg17: memref<1x32xf32, #tpu.memory_space<vmem>>, %arg18: memref<1x32xf32, #tpu.memory_space<vmem>>, %arg19: memref<1x32xf32, #tpu.memory_space<vmem>>, %arg20: memref<1x8x32xf32, #tpu.memory_space<vmem>>) attributes {dimension_semantics = [#tpu.dimension_semantics<parallel>, #tpu.dimension_semantics<parallel>], iteration_bounds = array<i64: 2, 1>, scalar_prefetch = 0 : i64, scratch_operands = 0 : i64, tpu.core_type = #tpu.core_type<tc>, window_params = [{transform_indices = @transform_0, window_bounds = array<i64: 1, 8, 32>}, {transform_indices = @transform_1, window_bounds = array<i64: 1, 8, 32>}, {pipeline_mode = #tpu.pipeline_mode<synchronous>, transform_indices = @transform_2, window_bounds = array<i64: 32, 32>}, {pipeline_mode = #tpu.pipeline_mode<synchronous>, transform_indices = @transform_3, window_bounds = array<i64: 32, 32>}, {pipeline_mode = #tpu.pipeline_mode<synchronous>, transform_indices = @transform_4, window_bounds = array<i64: 32, 32>}, {pipeline_mode = #tpu.pipeline_mode<synchronous>, transform_indices = @transform_5, window_bounds = array<i64: 4, 8, 32>}, {pipeline_mode = #tpu.pipeline_mode<synchronous>, transform_indices = @transform_6, window_bounds = array<i64: 32, 128>}, {pipeline_mode = #tpu.pipeline_mode<synchronous>, transform_indices = @transform_7, window_bounds = array<i64: 128, 32>}, {pipeline_mode = #tpu.pipeline_mode<synchronous>, transform_indices = @transform_8, window_bounds = array<i64: 1, 32>}, {pipeline_mode = #tpu.pipeline_mode<synchronous>, transform_indices = @transform_9, window_bounds = array<i64: 1, 32>}, {pipeline_mode = #tpu.pipeline_mode<synchronous>, transform_indices = @transform_10, window_bounds = array<i64: 1, 32>}, {pipeline_mode = #tpu.pipeline_mode<synchronous>, transform_indices = @transform_11, window_bounds = array<i64: 1, 32>}, {pipeline_mode = #tpu.pipeline_mode<synchronous>, transform_indices = @transform_12, window_bounds = array<i64: 1, 128>}, {pipeline_mode = #tpu.pipeline_mode<synchronous>, transform_indices = @transform_13, window_bounds = array<i64: 1, 32>}, {pipeline_mode = #tpu.pipeline_mode<synchronous>, transform_indices = @transform_14, window_bounds = array<i64: 1, 32>}, {pipeline_mode = #tpu.pipeline_mode<synchronous>, transform_indices = @transform_15, window_bounds = array<i64: 1, 32>}, {pipeline_mode = #tpu.pipeline_mode<synchronous>, transform_indices = @transform_16, window_bounds = array<i64: 1, 32>}, {pipeline_mode = #tpu.pipeline_mode<synchronous>, transform_indices = @transform_17, window_bounds = array<i64: 1, 32>}, {transform_indices = @transform_18, window_bounds = array<i64: 1, 8, 32>}]} {
    %c0 = arith.constant 0 : index
    %c0_0 = arith.constant 0 : index
    %c0_1 = arith.constant 0 : index
    %0 = vector.load %arg2[%c0, %c0_0, %c0_1] : memref<1x8x32xf32, #tpu.memory_space<vmem>>, vector<1x8x32xf32>
    %1 = vector.shape_cast %0 : vector<1x8x32xf32> to vector<8x32xf32>
    %c0_2 = arith.constant 0 : index
    %c0_3 = arith.constant 0 : index
    %c0_4 = arith.constant 0 : index
    %2 = vector.load %arg3[%c0_2, %c0_3, %c0_4] : memref<1x8x32xf32, #tpu.memory_space<vmem>>, vector<1x8x32xf32>
    %3 = vector.shape_cast %2 : vector<1x8x32xf32> to vector<8x32xf32>
    %4 = arith.truncf %1 : vector<8x32xf32> to vector<8x32xbf16>
    %c0_5 = arith.constant 0 : index
    %c0_6 = arith.constant 0 : index
    %5 = vector.load %arg4[%c0_5, %c0_6] : memref<32x32xbf16, #tpu.memory_space<vmem>>, vector<32x32xbf16>
    %cst = arith.constant dense<0.000000e+00> : vector<8x32xf32>
    %6 = tpu.matmul %4, %5, %cst {dimension_numbers = #tpu.dot_dimension_numbers<[1], [0], [0], [1], [0, 0, 1, 1], [], []>} : vector<8x32xbf16>, vector<32x32xbf16>, vector<8x32xf32> -> vector<8x32xf32>
    %c0_7 = arith.constant 0 : index
    %c0_8 = arith.constant 0 : index
    %7 = vector.load %arg10[%c0_7, %c0_8] : memref<1x32xf32, #tpu.memory_space<vmem>>, vector<1x32xf32>
    %8 = vector.broadcast %7 : vector<1x32xf32> to vector<8x32xf32>
    %9 = arith.addf %6, %8 : vector<8x32xf32>
    %10 = arith.truncf %3 : vector<8x32xf32> to vector<8x32xbf16>
    %c0_9 = arith.constant 0 : index
    %c0_10 = arith.constant 0 : index
    %11 = vector.load %arg5[%c0_9, %c0_10] : memref<32x32xbf16, #tpu.memory_space<vmem>>, vector<32x32xbf16>
    %cst_11 = arith.constant dense<0.000000e+00> : vector<8x32xf32>
    %12 = tpu.matmul %10, %11, %cst_11 {dimension_numbers = #tpu.dot_dimension_numbers<[1], [0], [0], [1], [0, 0, 1, 1], [], []>} : vector<8x32xbf16>, vector<32x32xbf16>, vector<8x32xf32> -> vector<8x32xf32>
    %c0_12 = arith.constant 0 : index
    %c0_13 = arith.constant 0 : index
    %13 = vector.load %arg11[%c0_12, %c0_13] : memref<1x32xf32, #tpu.memory_space<vmem>>, vector<1x32xf32>
    %14 = vector.broadcast %13 : vector<1x32xf32> to vector<8x32xf32>
    %15 = arith.addf %12, %14 : vector<8x32xf32>
    %16 = arith.truncf %3 : vector<8x32xf32> to vector<8x32xbf16>
    %c0_14 = arith.constant 0 : index
    %c0_15 = arith.constant 0 : index
    %17 = vector.load %arg6[%c0_14, %c0_15] : memref<32x32xbf16, #tpu.memory_space<vmem>>, vector<32x32xbf16>
    %cst_16 = arith.constant dense<0.000000e+00> : vector<8x32xf32>
    %18 = tpu.matmul %16, %17, %cst_16 {dimension_numbers = #tpu.dot_dimension_numbers<[1], [0], [0], [1], [0, 0, 1, 1], [], []>} : vector<8x32xbf16>, vector<32x32xbf16>, vector<8x32xf32> -> vector<8x32xf32>
    %c0_17 = arith.constant 0 : index
    %c0_18 = arith.constant 0 : index
    %19 = vector.load %arg12[%c0_17, %c0_18] : memref<1x32xf32, #tpu.memory_space<vmem>>, vector<1x32xf32>
    %20 = vector.broadcast %19 : vector<1x32xf32> to vector<8x32xf32>
    %21 = arith.addf %18, %20 : vector<8x32xf32>
    %cst_19 = arith.constant 0.000000e+00 : f32
    %22 = vector.broadcast %cst_19 : f32 to vector<8x32xf32>
    %23 = vector.extract_strided_slice %9 {offsets = [0, 0], sizes = [8, 8], strides = [1, 1]} : vector<8x32xf32> to vector<8x8xf32>
    %24 = arith.truncf %23 : vector<8x8xf32> to vector<8x8xbf16>
    %25 = vector.extract_strided_slice %15 {offsets = [0, 0], sizes = [8, 8], strides = [1, 1]} : vector<8x32xf32> to vector<8x8xf32>
    %26 = arith.truncf %25 : vector<8x8xf32> to vector<8x8xbf16>
    %27 = vector.extract_strided_slice %21 {offsets = [0, 0], sizes = [8, 8], strides = [1, 1]} : vector<8x32xf32> to vector<8x8xf32>
    %28 = arith.truncf %27 : vector<8x8xf32> to vector<8x8xbf16>
    %cst_20 = arith.constant dense<0.000000e+00> : vector<8x8xf32>
    %29 = tpu.matmul %24, %26, %cst_20 {dimension_numbers = #tpu.dot_dimension_numbers<[1], [1], [0], [0], [0, 0, 1, 0], [], []>} : vector<8x8xbf16>, vector<8x8xbf16>, vector<8x8xf32> -> vector<8x8xf32>
    %cst_21 = arith.constant 0.353553385 : f32
    %30 = vector.broadcast %cst_21 : f32 to vector<8x8xf32>
    %31 = arith.mulf %29, %30 : vector<8x8xf32>
    %cst_22 = arith.constant dense<0xFF800000> : vector<8xf32>
    %32 = vector.multi_reduction <maximumf>, %31, %cst_22 [1] : vector<8x8xf32> to vector<8xf32>
    %33 = vector.shape_cast %32 : vector<8xf32> to vector<8x1xf32>
    %34 = vector.broadcast %33 : vector<8x1xf32> to vector<8x8xf32>
    %35 = arith.subf %31, %34 : vector<8x8xf32>
    %36 = math.exp %35 : vector<8x8xf32>
    %cst_23 = arith.constant dense<0.000000e+00> : vector<8xf32>
    %37 = vector.multi_reduction <add>, %36, %cst_23 [1] : vector<8x8xf32> to vector<8xf32>
    %38 = vector.shape_cast %37 : vector<8xf32> to vector<8x1xf32>
    %39 = tpu.reciprocal %38 {approx = true} : vector<8x1xf32> -> vector<8x1xf32>
    %40 = vector.broadcast %39 : vector<8x1xf32> to vector<8x8xf32>
    %41 = arith.mulf %36, %40 : vector<8x8xf32>
    %42 = arith.truncf %41 : vector<8x8xf32> to vector<8x8xbf16>
    %cst_24 = arith.constant dense<0.000000e+00> : vector<8x8xf32>
    %43 = tpu.matmul %42, %28, %cst_24 {dimension_numbers = #tpu.dot_dimension_numbers<[1], [0], [0], [1], [0, 0, 1, 1], [], []>} : vector<8x8xbf16>, vector<8x8xbf16>, vector<8x8xf32> -> vector<8x8xf32>
    %44 = arith.truncf %43 : vector<8x8xf32> to vector<8x8xbf16>
    %c0_25 = arith.constant 0 : index
    %c0_26 = arith.constant 0 : index
    %c0_27 = arith.constant 0 : index
    %45 = vector.load %arg7[%c0_25, %c0_26, %c0_27] : memref<4x8x32xbf16, #tpu.memory_space<vmem>>, vector<1x8x32xbf16>
    %46 = vector.shape_cast %45 : vector<1x8x32xbf16> to vector<8x32xbf16>
    %cst_28 = arith.constant dense<0.000000e+00> : vector<8x32xf32>
    %47 = tpu.matmul %44, %46, %cst_28 {dimension_numbers = #tpu.dot_dimension_numbers<[1], [0], [0], [1], [0, 0, 1, 1], [], []>} : vector<8x8xbf16>, vector<8x32xbf16>, vector<8x32xf32> -> vector<8x32xf32>
    %48 = arith.addf %22, %47 : vector<8x32xf32>
    %49 = vector.extract_strided_slice %9 {offsets = [0, 8], sizes = [8, 8], strides = [1, 1]} : vector<8x32xf32> to vector<8x8xf32>
    %50 = arith.truncf %49 : vector<8x8xf32> to vector<8x8xbf16>
    %51 = vector.extract_strided_slice %15 {offsets = [0, 8], sizes = [8, 8], strides = [1, 1]} : vector<8x32xf32> to vector<8x8xf32>
    %52 = arith.truncf %51 : vector<8x8xf32> to vector<8x8xbf16>
    %53 = vector.extract_strided_slice %21 {offsets = [0, 8], sizes = [8, 8], strides = [1, 1]} : vector<8x32xf32> to vector<8x8xf32>
    %54 = arith.truncf %53 : vector<8x8xf32> to vector<8x8xbf16>
    %cst_29 = arith.constant dense<0.000000e+00> : vector<8x8xf32>
    %55 = tpu.matmul %50, %52, %cst_29 {dimension_numbers = #tpu.dot_dimension_numbers<[1], [1], [0], [0], [0, 0, 1, 0], [], []>} : vector<8x8xbf16>, vector<8x8xbf16>, vector<8x8xf32> -> vector<8x8xf32>
    %cst_30 = arith.constant 0.353553385 : f32
    %56 = vector.broadcast %cst_30 : f32 to vector<8x8xf32>
    %57 = arith.mulf %55, %56 : vector<8x8xf32>
    %cst_31 = arith.constant dense<0xFF800000> : vector<8xf32>
    %58 = vector.multi_reduction <maximumf>, %57, %cst_31 [1] : vector<8x8xf32> to vector<8xf32>
    %59 = vector.shape_cast %58 : vector<8xf32> to vector<8x1xf32>
    %60 = vector.broadcast %59 : vector<8x1xf32> to vector<8x8xf32>
    %61 = arith.subf %57, %60 : vector<8x8xf32>
    %62 = math.exp %61 : vector<8x8xf32>
    %cst_32 = arith.constant dense<0.000000e+00> : vector<8xf32>
    %63 = vector.multi_reduction <add>, %62, %cst_32 [1] : vector<8x8xf32> to vector<8xf32>
    %64 = vector.shape_cast %63 : vector<8xf32> to vector<8x1xf32>
    %65 = tpu.reciprocal %64 {approx = true} : vector<8x1xf32> -> vector<8x1xf32>
    %66 = vector.broadcast %65 : vector<8x1xf32> to vector<8x8xf32>
    %67 = arith.mulf %62, %66 : vector<8x8xf32>
    %68 = arith.truncf %67 : vector<8x8xf32> to vector<8x8xbf16>
    %cst_33 = arith.constant dense<0.000000e+00> : vector<8x8xf32>
    %69 = tpu.matmul %68, %54, %cst_33 {dimension_numbers = #tpu.dot_dimension_numbers<[1], [0], [0], [1], [0, 0, 1, 1], [], []>} : vector<8x8xbf16>, vector<8x8xbf16>, vector<8x8xf32> -> vector<8x8xf32>
    %70 = arith.truncf %69 : vector<8x8xf32> to vector<8x8xbf16>
    %c1 = arith.constant 1 : index
    %c0_34 = arith.constant 0 : index
    %c0_35 = arith.constant 0 : index
    %71 = vector.load %arg7[%c1, %c0_34, %c0_35] : memref<4x8x32xbf16, #tpu.memory_space<vmem>>, vector<1x8x32xbf16>
    %72 = vector.shape_cast %71 : vector<1x8x32xbf16> to vector<8x32xbf16>
    %cst_36 = arith.constant dense<0.000000e+00> : vector<8x32xf32>
    %73 = tpu.matmul %70, %72, %cst_36 {dimension_numbers = #tpu.dot_dimension_numbers<[1], [0], [0], [1], [0, 0, 1, 1], [], []>} : vector<8x8xbf16>, vector<8x32xbf16>, vector<8x32xf32> -> vector<8x32xf32>
    %74 = arith.addf %48, %73 : vector<8x32xf32>
    %75 = vector.extract_strided_slice %9 {offsets = [0, 16], sizes = [8, 8], strides = [1, 1]} : vector<8x32xf32> to vector<8x8xf32>
    %76 = arith.truncf %75 : vector<8x8xf32> to vector<8x8xbf16>
    %77 = vector.extract_strided_slice %15 {offsets = [0, 16], sizes = [8, 8], strides = [1, 1]} : vector<8x32xf32> to vector<8x8xf32>
    %78 = arith.truncf %77 : vector<8x8xf32> to vector<8x8xbf16>
    %79 = vector.extract_strided_slice %21 {offsets = [0, 16], sizes = [8, 8], strides = [1, 1]} : vector<8x32xf32> to vector<8x8xf32>
    %80 = arith.truncf %79 : vector<8x8xf32> to vector<8x8xbf16>
    %cst_37 = arith.constant dense<0.000000e+00> : vector<8x8xf32>
    %81 = tpu.matmul %76, %78, %cst_37 {dimension_numbers = #tpu.dot_dimension_numbers<[1], [1], [0], [0], [0, 0, 1, 0], [], []>} : vector<8x8xbf16>, vector<8x8xbf16>, vector<8x8xf32> -> vector<8x8xf32>
    %cst_38 = arith.constant 0.353553385 : f32
    %82 = vector.broadcast %cst_38 : f32 to vector<8x8xf32>
    %83 = arith.mulf %81, %82 : vector<8x8xf32>
    %cst_39 = arith.constant dense<0xFF800000> : vector<8xf32>
    %84 = vector.multi_reduction <maximumf>, %83, %cst_39 [1] : vector<8x8xf32> to vector<8xf32>
    %85 = vector.shape_cast %84 : vector<8xf32> to vector<8x1xf32>
    %86 = vector.broadcast %85 : vector<8x1xf32> to vector<8x8xf32>
    %87 = arith.subf %83, %86 : vector<8x8xf32>
    %88 = math.exp %87 : vector<8x8xf32>
    %cst_40 = arith.constant dense<0.000000e+00> : vector<8xf32>
    %89 = vector.multi_reduction <add>, %88, %cst_40 [1] : vector<8x8xf32> to vector<8xf32>
    %90 = vector.shape_cast %89 : vector<8xf32> to vector<8x1xf32>
    %91 = tpu.reciprocal %90 {approx = true} : vector<8x1xf32> -> vector<8x1xf32>
    %92 = vector.broadcast %91 : vector<8x1xf32> to vector<8x8xf32>
    %93 = arith.mulf %88, %92 : vector<8x8xf32>
    %94 = arith.truncf %93 : vector<8x8xf32> to vector<8x8xbf16>
    %cst_41 = arith.constant dense<0.000000e+00> : vector<8x8xf32>
    %95 = tpu.matmul %94, %80, %cst_41 {dimension_numbers = #tpu.dot_dimension_numbers<[1], [0], [0], [1], [0, 0, 1, 1], [], []>} : vector<8x8xbf16>, vector<8x8xbf16>, vector<8x8xf32> -> vector<8x8xf32>
    %96 = arith.truncf %95 : vector<8x8xf32> to vector<8x8xbf16>
    %c2 = arith.constant 2 : index
    %c0_42 = arith.constant 0 : index
    %c0_43 = arith.constant 0 : index
    %97 = vector.load %arg7[%c2, %c0_42, %c0_43] : memref<4x8x32xbf16, #tpu.memory_space<vmem>>, vector<1x8x32xbf16>
    %98 = vector.shape_cast %97 : vector<1x8x32xbf16> to vector<8x32xbf16>
    %cst_44 = arith.constant dense<0.000000e+00> : vector<8x32xf32>
    %99 = tpu.matmul %96, %98, %cst_44 {dimension_numbers = #tpu.dot_dimension_numbers<[1], [0], [0], [1], [0, 0, 1, 1], [], []>} : vector<8x8xbf16>, vector<8x32xbf16>, vector<8x32xf32> -> vector<8x32xf32>
    %100 = arith.addf %74, %99 : vector<8x32xf32>
    %101 = vector.extract_strided_slice %9 {offsets = [0, 24], sizes = [8, 8], strides = [1, 1]} : vector<8x32xf32> to vector<8x8xf32>
    %102 = arith.truncf %101 : vector<8x8xf32> to vector<8x8xbf16>
    %103 = vector.extract_strided_slice %15 {offsets = [0, 24], sizes = [8, 8], strides = [1, 1]} : vector<8x32xf32> to vector<8x8xf32>
    %104 = arith.truncf %103 : vector<8x8xf32> to vector<8x8xbf16>
    %105 = vector.extract_strided_slice %21 {offsets = [0, 24], sizes = [8, 8], strides = [1, 1]} : vector<8x32xf32> to vector<8x8xf32>
    %106 = arith.truncf %105 : vector<8x8xf32> to vector<8x8xbf16>
    %cst_45 = arith.constant dense<0.000000e+00> : vector<8x8xf32>
    %107 = tpu.matmul %102, %104, %cst_45 {dimension_numbers = #tpu.dot_dimension_numbers<[1], [1], [0], [0], [0, 0, 1, 0], [], []>} : vector<8x8xbf16>, vector<8x8xbf16>, vector<8x8xf32> -> vector<8x8xf32>
    %cst_46 = arith.constant 0.353553385 : f32
    %108 = vector.broadcast %cst_46 : f32 to vector<8x8xf32>
    %109 = arith.mulf %107, %108 : vector<8x8xf32>
    %cst_47 = arith.constant dense<0xFF800000> : vector<8xf32>
    %110 = vector.multi_reduction <maximumf>, %109, %cst_47 [1] : vector<8x8xf32> to vector<8xf32>
    %111 = vector.shape_cast %110 : vector<8xf32> to vector<8x1xf32>
    %112 = vector.broadcast %111 : vector<8x1xf32> to vector<8x8xf32>
    %113 = arith.subf %109, %112 : vector<8x8xf32>
    %114 = math.exp %113 : vector<8x8xf32>
    %cst_48 = arith.constant dense<0.000000e+00> : vector<8xf32>
    %115 = vector.multi_reduction <add>, %114, %cst_48 [1] : vector<8x8xf32> to vector<8xf32>
    %116 = vector.shape_cast %115 : vector<8xf32> to vector<8x1xf32>
    %117 = tpu.reciprocal %116 {approx = true} : vector<8x1xf32> -> vector<8x1xf32>
    %118 = vector.broadcast %117 : vector<8x1xf32> to vector<8x8xf32>
    %119 = arith.mulf %114, %118 : vector<8x8xf32>
    %120 = arith.truncf %119 : vector<8x8xf32> to vector<8x8xbf16>
    %cst_49 = arith.constant dense<0.000000e+00> : vector<8x8xf32>
    %121 = tpu.matmul %120, %106, %cst_49 {dimension_numbers = #tpu.dot_dimension_numbers<[1], [0], [0], [1], [0, 0, 1, 1], [], []>} : vector<8x8xbf16>, vector<8x8xbf16>, vector<8x8xf32> -> vector<8x8xf32>
    %122 = arith.truncf %121 : vector<8x8xf32> to vector<8x8xbf16>
    %c3 = arith.constant 3 : index
    %c0_50 = arith.constant 0 : index
    %c0_51 = arith.constant 0 : index
    %123 = vector.load %arg7[%c3, %c0_50, %c0_51] : memref<4x8x32xbf16, #tpu.memory_space<vmem>>, vector<1x8x32xbf16>
    %124 = vector.shape_cast %123 : vector<1x8x32xbf16> to vector<8x32xbf16>
    %cst_52 = arith.constant dense<0.000000e+00> : vector<8x32xf32>
    %125 = tpu.matmul %122, %124, %cst_52 {dimension_numbers = #tpu.dot_dimension_numbers<[1], [0], [0], [1], [0, 0, 1, 1], [], []>} : vector<8x8xbf16>, vector<8x32xbf16>, vector<8x32xf32> -> vector<8x32xf32>
    %126 = arith.addf %100, %125 : vector<8x32xf32>
    %c0_53 = arith.constant 0 : index
    %c0_54 = arith.constant 0 : index
    %127 = vector.load %arg13[%c0_53, %c0_54] : memref<1x32xf32, #tpu.memory_space<vmem>>, vector<1x32xf32>
    %128 = vector.broadcast %127 : vector<1x32xf32> to vector<8x32xf32>
    %129 = arith.addf %126, %128 : vector<8x32xf32>
    %130 = arith.addf %1, %129 : vector<8x32xf32>
    %c0_55 = arith.constant 0 : index
    %c0_56 = arith.constant 0 : index
    %131 = vector.load %arg16[%c0_55, %c0_56] : memref<1x32xf32, #tpu.memory_space<vmem>>, vector<1x32xf32>
    %c0_57 = arith.constant 0 : index
    %c0_58 = arith.constant 0 : index
    %132 = vector.load %arg17[%c0_57, %c0_58] : memref<1x32xf32, #tpu.memory_space<vmem>>, vector<1x32xf32>
    %cst_59 = arith.constant dense<0.000000e+00> : vector<8xf32>
    %133 = vector.multi_reduction <add>, %130, %cst_59 [1] : vector<8x32xf32> to vector<8xf32>
    %134 = vector.shape_cast %133 : vector<8xf32> to vector<8x1xf32>
    %cst_60 = arith.constant 3.200000e+01 : f32
    %135 = vector.broadcast %cst_60 : f32 to vector<8x1xf32>
    %136 = arith.divf %134, %135 : vector<8x1xf32>
    %137 = vector.broadcast %136 : vector<8x1xf32> to vector<8x32xf32>
    %138 = arith.subf %130, %137 : vector<8x32xf32>
    %139 = arith.mulf %138, %138 : vector<8x32xf32>
    %cst_61 = arith.constant dense<0.000000e+00> : vector<8xf32>
    %140 = vector.multi_reduction <add>, %139, %cst_61 [1] : vector<8x32xf32> to vector<8xf32>
    %141 = vector.shape_cast %140 : vector<8xf32> to vector<8x1xf32>
    %cst_62 = arith.constant 3.200000e+01 : f32
    %142 = vector.broadcast %cst_62 : f32 to vector<8x1xf32>
    %143 = arith.divf %141, %142 : vector<8x1xf32>
    %144 = vector.broadcast %136 : vector<8x1xf32> to vector<8x32xf32>
    %145 = arith.subf %130, %144 : vector<8x32xf32>
    %cst_63 = arith.constant 9.99999974E-6 : f32
    %146 = vector.broadcast %cst_63 : f32 to vector<8x1xf32>
    %147 = arith.addf %143, %146 : vector<8x1xf32>
    %148 = math.rsqrt %147 : vector<8x1xf32>
    %149 = vector.broadcast %148 : vector<8x1xf32> to vector<8x32xf32>
    %150 = arith.mulf %145, %149 : vector<8x32xf32>
    %151 = vector.broadcast %131 : vector<1x32xf32> to vector<8x32xf32>
    %152 = arith.mulf %150, %151 : vector<8x32xf32>
    %153 = vector.broadcast %132 : vector<1x32xf32> to vector<8x32xf32>
    %154 = arith.addf %152, %153 : vector<8x32xf32>
    %155 = arith.truncf %154 : vector<8x32xf32> to vector<8x32xbf16>
    %cst_64 = arith.constant 0.000000e+00 : f32
    %156 = vector.broadcast %cst_64 : f32 to vector<8x32xf32>
    %c0_65 = arith.constant 0 : index
    %c0_66 = arith.constant 0 : index
    %157 = vector.load %arg8[%c0_65, %c0_66] : memref<32x128xbf16, #tpu.memory_space<vmem>>, vector<32x128xbf16>
    %cst_67 = arith.constant dense<0.000000e+00> : vector<8x128xf32>
    %158 = tpu.matmul %155, %157, %cst_67 {dimension_numbers = #tpu.dot_dimension_numbers<[1], [0], [0], [1], [0, 0, 1, 1], [], []>} : vector<8x32xbf16>, vector<32x128xbf16>, vector<8x128xf32> -> vector<8x128xf32>
    %c0_68 = arith.constant 0 : index
    %c0_69 = arith.constant 0 : index
    %159 = vector.load %arg14[%c0_68, %c0_69] : memref<1x128xf32, #tpu.memory_space<vmem>>, vector<1x128xf32>
    %160 = vector.broadcast %159 : vector<1x128xf32> to vector<8x128xf32>
    %161 = arith.addf %158, %160 : vector<8x128xf32>
    %cst_70 = arith.constant 0.000000e+00 : f32
    %162 = vector.broadcast %cst_70 : f32 to vector<8x128xf32>
    %163 = arith.maximumf %161, %162 : vector<8x128xf32>
    %164 = arith.truncf %163 : vector<8x128xf32> to vector<8x128xbf16>
    %c0_71 = arith.constant 0 : index
    %c0_72 = arith.constant 0 : index
    %165 = vector.load %arg9[%c0_71, %c0_72] : memref<128x32xbf16, #tpu.memory_space<vmem>>, vector<128x32xbf16>
    %cst_73 = arith.constant dense<0.000000e+00> : vector<8x32xf32>
    %166 = tpu.matmul %164, %165, %cst_73 {dimension_numbers = #tpu.dot_dimension_numbers<[1], [0], [0], [1], [0, 0, 1, 1], [], []>} : vector<8x128xbf16>, vector<128x32xbf16>, vector<8x32xf32> -> vector<8x32xf32>
    %167 = arith.addf %156, %166 : vector<8x32xf32>
    %c0_74 = arith.constant 0 : index
    %c0_75 = arith.constant 0 : index
    %168 = vector.load %arg15[%c0_74, %c0_75] : memref<1x32xf32, #tpu.memory_space<vmem>>, vector<1x32xf32>
    %169 = vector.broadcast %168 : vector<1x32xf32> to vector<8x32xf32>
    %170 = arith.addf %167, %169 : vector<8x32xf32>
    %171 = arith.addf %154, %170 : vector<8x32xf32>
    %c0_76 = arith.constant 0 : index
    %c0_77 = arith.constant 0 : index
    %172 = vector.load %arg18[%c0_76, %c0_77] : memref<1x32xf32, #tpu.memory_space<vmem>>, vector<1x32xf32>
    %c0_78 = arith.constant 0 : index
    %c0_79 = arith.constant 0 : index
    %173 = vector.load %arg19[%c0_78, %c0_79] : memref<1x32xf32, #tpu.memory_space<vmem>>, vector<1x32xf32>
    %cst_80 = arith.constant dense<0.000000e+00> : vector<8xf32>
    %174 = vector.multi_reduction <add>, %171, %cst_80 [1] : vector<8x32xf32> to vector<8xf32>
    %175 = vector.shape_cast %174 : vector<8xf32> to vector<8x1xf32>
    %cst_81 = arith.constant 3.200000e+01 : f32
    %176 = vector.broadcast %cst_81 : f32 to vector<8x1xf32>
    %177 = arith.divf %175, %176 : vector<8x1xf32>
    %178 = vector.broadcast %177 : vector<8x1xf32> to vector<8x32xf32>
    %179 = arith.subf %171, %178 : vector<8x32xf32>
    %180 = arith.mulf %179, %179 : vector<8x32xf32>
    %cst_82 = arith.constant dense<0.000000e+00> : vector<8xf32>
    %181 = vector.multi_reduction <add>, %180, %cst_82 [1] : vector<8x32xf32> to vector<8xf32>
    %182 = vector.shape_cast %181 : vector<8xf32> to vector<8x1xf32>
    %cst_83 = arith.constant 3.200000e+01 : f32
    %183 = vector.broadcast %cst_83 : f32 to vector<8x1xf32>
    %184 = arith.divf %182, %183 : vector<8x1xf32>
    %185 = vector.broadcast %177 : vector<8x1xf32> to vector<8x32xf32>
    %186 = arith.subf %171, %185 : vector<8x32xf32>
    %cst_84 = arith.constant 9.99999974E-6 : f32
    %187 = vector.broadcast %cst_84 : f32 to vector<8x1xf32>
    %188 = arith.addf %184, %187 : vector<8x1xf32>
    %189 = math.rsqrt %188 : vector<8x1xf32>
    %190 = vector.broadcast %189 : vector<8x1xf32> to vector<8x32xf32>
    %191 = arith.mulf %186, %190 : vector<8x32xf32>
    %192 = vector.broadcast %172 : vector<1x32xf32> to vector<8x32xf32>
    %193 = arith.mulf %191, %192 : vector<8x32xf32>
    %194 = vector.broadcast %173 : vector<1x32xf32> to vector<8x32xf32>
    %195 = arith.addf %193, %194 : vector<8x32xf32>
    %c0_85 = arith.constant 0 : index
    %c0_86 = arith.constant 0 : index
    %c0_87 = arith.constant 0 : index
    %196 = vector.load %arg20[%c0_85, %c0_86, %c0_87] : memref<1x8x32xf32, #tpu.memory_space<vmem>>, vector<1x8x32xf32>
    %197 = vector.shape_cast %196 : vector<1x8x32xf32> to vector<8x32xf32>
    %198 = vector.shape_cast %195 : vector<8x32xf32> to vector<1x8x32xf32>
    tpu.vector_store %arg20[%c0_85, %c0_86, %c0_87], %198 {strides = array<i32>} : memref<1x8x32xf32, #tpu.memory_space<vmem>>, vector<1x8x32xf32>,
    return
  }
  func.func @transform_0(%arg0: i32, %arg1: i32) -> (i32, i32, i32) {
    %c0_i32 = arith.constant 0 : i32
    %c0_i32_0 = arith.constant 0 : i32
    return %arg0, %arg1, %c0_i32 : i32, i32, i32
  }
  func.func @transform_1(%arg0: i32, %arg1: i32) -> (i32, i32, i32) {
    %c0_i32 = arith.constant 0 : i32
    %c0_i32_0 = arith.constant 0 : i32
    %c0_i32_1 = arith.constant 0 : i32
    return %arg0, %c0_i32, %c0_i32_0 : i32, i32, i32
  }
  func.func @transform_2(%arg0: i32, %arg1: i32) -> (i32, i32) {
    %c0_i32 = arith.constant 0 : i32
    %c0_i32_0 = arith.constant 0 : i32
    %c0_i32_1 = arith.constant 0 : i32
    return %c0_i32, %c0_i32_0 : i32, i32
  }
  func.func @transform_3(%arg0: i32, %arg1: i32) -> (i32, i32) {
    %c0_i32 = arith.constant 0 : i32
    %c0_i32_0 = arith.constant 0 : i32
    %c0_i32_1 = arith.constant 0 : i32
    return %c0_i32, %c0_i32_0 : i32, i32
  }
  func.func @transform_4(%arg0: i32, %arg1: i32) -> (i32, i32) {
    %c0_i32 = arith.constant 0 : i32
    %c0_i32_0 = arith.constant 0 : i32
    %c0_i32_1 = arith.constant 0 : i32
    return %c0_i32, %c0_i32_0 : i32, i32
  }
  func.func @transform_5(%arg0: i32, %arg1: i32) -> (i32, i32, i32) {
    %c0_i32 = arith.constant 0 : i32
    %c0_i32_0 = arith.constant 0 : i32
    %c0_i32_1 = arith.constant 0 : i32
    %c0_i32_2 = arith.constant 0 : i32
    return %c0_i32, %c0_i32_0, %c0_i32_1 : i32, i32, i32
  }
  func.func @transform_6(%arg0: i32, %arg1: i32) -> (i32, i32) {
    %c0_i32 = arith.constant 0 : i32
    %c0_i32_0 = arith.constant 0 : i32
    %c0_i32_1 = arith.constant 0 : i32
    return %c0_i32, %c0_i32_0 : i32, i32
  }
  func.func @transform_7(%arg0: i32, %arg1: i32) -> (i32, i32) {
    %c0_i32 = arith.constant 0 : i32
    %c0_i32_0 = arith.constant 0 : i32
    %c0_i32_1 = arith.constant 0 : i32
    return %c0_i32, %c0_i32_0 : i32, i32
  }
  func.func @transform_8(%arg0: i32, %arg1: i32) -> (i32, i32) {
    %c0_i32 = arith.constant 0 : i32
    %c0_i32_0 = arith.constant 0 : i32
    %c0_i32_1 = arith.constant 0 : i32
    return %c0_i32, %c0_i32_0 : i32, i32
  }
  func.func @transform_9(%arg0: i32, %arg1: i32) -> (i32, i32) {
    %c0_i32 = arith.constant 0 : i32
    %c0_i32_0 = arith.constant 0 : i32
    %c0_i32_1 = arith.constant 0 : i32
    return %c0_i32, %c0_i32_0 : i32, i32
  }
  func.func @transform_10(%arg0: i32, %arg1: i32) -> (i32, i32) {
    %c0_i32 = arith.constant 0 : i32
    %c0_i32_0 = arith.constant 0 : i32
    %c0_i32_1 = arith.constant 0 : i32
    return %c0_i32, %c0_i32_0 : i32, i32
  }
  func.func @transform_11(%arg0: i32, %arg1: i32) -> (i32, i32) {
    %c0_i32 = arith.constant 0 : i32
    %c0_i32_0 = arith.constant 0 : i32
    %c0_i32_1 = arith.constant 0 : i32
    return %c0_i32, %c0_i32_0 : i32, i32
  }
  func.func @transform_12(%arg0: i32, %arg1: i32) -> (i32, i32) {
    %c0_i32 = arith.constant 0 : i32
    %c0_i32_0 = arith.constant 0 : i32
    %c0_i32_1 = arith.constant 0 : i32
    return %c0_i32, %c0_i32_0 : i32, i32
  }
  func.func @transform_13(%arg0: i32, %arg1: i32) -> (i32, i32) {
    %c0_i32 = arith.constant 0 : i32
    %c0_i32_0 = arith.constant 0 : i32
    %c0_i32_1 = arith.constant 0 : i32
    return %c0_i32, %c0_i32_0 : i32, i32
  }
  func.func @transform_14(%arg0: i32, %arg1: i32) -> (i32, i32) {
    %c0_i32 = arith.constant 0 : i32
    %c0_i32_0 = arith.constant 0 : i32
    %c0_i32_1 = arith.constant 0 : i32
    return %c0_i32, %c0_i32_0 : i32, i32
  }
  func.func @transform_15(%arg0: i32, %arg1: i32) -> (i32, i32) {
    %c0_i32 = arith.constant 0 : i32
    %c0_i32_0 = arith.constant 0 : i32
    %c0_i32_1 = arith.constant 0 : i32
    return %c0_i32, %c0_i32_0 : i32, i32
  }
  func.func @transform_16(%arg0: i32, %arg1: i32) -> (i32, i32) {
    %c0_i32 = arith.constant 0 : i32
    %c0_i32_0 = arith.constant 0 : i32
    %c0_i32_1 = arith.constant 0 : i32
    return %c0_i32, %c0_i32_0 : i32, i32
  }
  func.func @transform_17(%arg0: i32, %arg1: i32) -> (i32, i32) {
    %c0_i32 = arith.constant 0 : i32
    %c0_i32_0 = arith.constant 0 : i32
    %c0_i32_1 = arith.constant 0 : i32
    return %c0_i32, %c0_i32_0 : i32, i32
  }
  func.func @transform_18(%arg0: i32, %arg1: i32) -> (i32, i32, i32) {
    %c0_i32 = arith.constant 0 : i32
    %c0_i32_0 = arith.constant 0 : i32
    return %arg0, %arg1, %c0_i32 : i32, i32, i32
  }
}

</mosaic_0001>

<bundles_post_ra>
// kernel: tpu_custom_call.1
= control target key start
LH: loop header
LB: loop body
LE: loop exit
PB: predicated region body
PF: predicated region fallthrough
CT: control target
= control target key end

     0   :  { %s4235_s0 = inlined_call_operand.hbm [shape: f32[2,8,32], index: 0, kind: input, shape index: {}]   ;;  %s4236_s1 = inlined_call_operand.hbm [shape: f32[2,8,32], index: 1, kind: input, shape index: {}]   ;;  %s4237_s2 = inlined_call_operand.hbm [shape: bf16[32,32], index: 2, kind: input, shape index: {}]   ;;  %s4238_s3 = inlined_call_operand.hbm [shape: bf16[32,32], index: 3, kind: input, shape index: {}]   ;;  %s4239_s4 = inlined_call_operand.hbm [shape: bf16[32,32], index: 4, kind: input, shape index: {}]   ;;  %s4240_s5 = inlined_call_operand.hbm [shape: bf16[4,8,32], index: 5, kind: input, shape index: {}]   ;;  %s4241_s6 = inlined_call_operand.hbm [shape: bf16[32,128], index: 6, kind: input, shape index: {}]   ;;  %s4242_s7 = inlined_call_operand.hbm [shape: bf16[128,32], index: 7, kind: input, shape index: {}]   ;;  %s4243_s8 = inlined_call_operand.hbm [shape: f32[1,32], index: 8, kind: input, shape index: {}]   ;;  %s4244_s9 = inlined_call_operand.hbm [shape: f32[1,32], index: 9, kind: input, shape index: {}]   ;;  %s4245_s10 = inlined_call_operand.hbm [shape: f32[1,32], index: 10, kind: input, shape index: {}]   ;;  %s4246_s11 = inlined_call_operand.hbm [shape: f32[1,32], index: 11, kind: input, shape index: {}]   ;;  %s4247_s12 = inlined_call_operand.hbm [shape: f32[1,128], index: 12, kind: input, shape index: {}]   ;;  %s4248_s13 = inlined_call_operand.hbm [shape: f32[1,32], index: 13, kind: input, shape index: {}]   ;;  %s4249_s14 = inlined_call_operand.hbm [shape: f32[1,32], index: 14, kind: input, shape index: {}]   ;;  %s4250_s15 = inlined_call_operand.hbm [shape: f32[1,32], index: 15, kind: input, shape index: {}]   ;;  %s4251_s16 = inlined_call_operand.hbm [shape: f32[1,32], index: 16, kind: input, shape index: {}]   ;;  %s4252_s17 = inlined_call_operand.hbm [shape: f32[1,32], index: 17, kind: input, shape index: {}]   ;;  %s4253_s18 = inlined_call_operand.hbm [shape: f32[2,8,32], index: 18, kind: output, shape index: {}]  }
   0x1   :  { %4273 = sst [smem:[#allocation52_spill]] %s4235_s0 }
   0x2   :  { %4274 = sst [smem:[#allocation53_spill]] %s4236_s1 }
   0x3   :  { %4275 = sst [smem:[#allocation54_spill]] %s4237_s2 }
   0x4   :  { %4276 = sst [smem:[#allocation55_spill]] %s4238_s3 }
   0x5   :  { %4277 = sst [smem:[#allocation56_spill]] %s4239_s4 }
   0x6   :  { %4278 = sst [smem:[#allocation57_spill]] %s4240_s5 }
   0x7   :  { %4279 = sst [smem:[#allocation58_spill]] %s4241_s6 }
   0x8   :  { %4280 = sst [smem:[#allocation59_spill]] %s4242_s7 }
   0x9   :  { %4281 = sst [smem:[#allocation60_spill]] %s4243_s8 }
   0xa   :  { %4282 = sst [smem:[#allocation61_spill]] %s4244_s9 }
   0xb   :  { %4283 = sst [smem:[#allocation62_spill]] %s4245_s10 }
   0xc   :  { %4284 = sst [smem:[#allocation63_spill]] %s4246_s11 }
   0xd   :  { %4285 = sst [smem:[#allocation64_spill]] %s4247_s12 }
   0xe   :  { %4286 = sst [smem:[#allocation65_spill]] %s4252_s17 }
   0xf   :  { %4287 = sst [smem:[#allocation66_spill]] %s4253_s18 }
  0x10   :  { %23 = vsyncpa [#allocation3], 0 }
  0x11   :  { %25 = vsyncpa [#allocation3 + $0x1], 0 }
  0x12   :  { %26 = vsyncpa [#allocation6], 0 }
  0x13   :  { %28 = vsyncpa [#allocation6 + $0x1], 0 }
  0x14   :  { %29 = vsyncpa [#allocation9], 0 }
  0x15   :  { %30 = vsyncpa [#allocation12], 0 }
  0x16   :  { %31 = vsyncpa [#allocation15], 0 }
  0x17   :  { %32 = vsyncpa [#allocation18], 0 }
  0x18   :  { %33 = vsyncpa [#allocation21], 0 }
  0x19   :  { %34 = vsyncpa [#allocation24], 0 }
  0x1a   :  { %35 = vsyncpa [#allocation27], 0 }
  0x1b   :  { %36 = vsyncpa [#allocation30], 0 }
  0x1c   :  { %37 = vsyncpa [#allocation4], 0 }
  0x1d   :  { %39 = vsyncpa [#allocation4 + $0x1], 0  ;;  %s3504_s27 = smov 0   ;;  %s3506_s28 = smov 0  }
  0x1e   :  { %s3508_s29 = smov 0   ;;  %s3510_s30 = smov 0  }
  0x1f   :  { %s3512_s0 = smov 0   ;;  %s3514_s19 = smov 0  }
  0x20 LB: > { %4288 = sst [smem:[#allocation44_spill]] %s3361_s27  ;;  %s3535_s1 = sadd.s32 4294967295, %s3381_s19   ;;  %s3381_s19 = sphi %s3514_s19, %s45_s19   ;;  %s3377_s0 = sphi %s3512_s0, %s4361_s0   ;;  %s3373_s30 = sphi %s3510_s30, %s4359_s30   ;;  %s3369_s29 = sphi %s3508_s29, %s4360_s29   ;;  %s3365_s28 = sphi %s3506_s28, %s4358_s28   ;;  %s3361_s27 = sphi %s3504_s27, %s4357_s27  }
  0x21   : > { %4289 = sst [smem:[#allocation45_spill]] %s3365_s28  ;;  %p2223_p0 = scmp.ge.s32.totalorder %s3381_s19, 1 }
  0x22   : > { %4290 = sst [smem:[#allocation46_spill]] %s3369_s29  ;;  %p4269_p1 = scmp.eq.s32.totalorder %s3535_s1, 0 }
  0x23   : > { %4291 = sst [smem:[#allocation47_spill]] %s3373_s30  ;;  %p480_p2 = scmp.lt.s32.totalorder %s3381_s19, 3 }
  0x24   : > { %4292 = sst [smem:[#allocation48_spill]] %s3377_s0  ;;  %s3383_s21 = smov [#allocation7]  }
  0x25   : > { %4293 = sst [smem:[#allocation49_spill]] %s3381_s19  ;;  %p3540_p3 = pnand %p2223_p0, %p480_p2 }
  0x26   : > { %4294 = sst [smem:[#allocation50_spill]] %s3535_s1  ;;  %s492_s22 = sshll.u32 %s3383_s21, 4  ;;  %s3544_s22 = int_to_ptr.vmem [resolvable:$true] %s492_s22 }
  0x27   : > { %s4295_s20 = scalar_select %p3540_p3, 1, 0 }
  0x28   : > { %p2550_p4 = pneg %p3540_p3  ;;  %s3384_s23 = smov [#allocation8]  }
  0x29   : > { %4296 = sst [smem:[#allocation51_spill]] %s4295_s20  ;;  %s505_s24 = sshll.u32 %s3384_s23, 4  ;;  %s3555_s24 = int_to_ptr.vmem [resolvable:$true] %s505_s24 }
  0x2a   : > { %p3551_p6 = pnand %p2550_p4, %p4269_p1  ;;  %s3385_s25 = smov [#allocation11]  }
  0x2b   : > { %s3557_s26 = sshll.u32 %s3385_s25, 4  ;;  %s4298_s30 = sld [smem:[#allocation54_spill]]  ;;  %s532_s26 = int_to_ptr.vmem [resolvable:$true] %s3557_s26 }
  0x2c   : > { %p3567_p8 = pneg %p3551_p6 }
  0x31   : > { %s4299_s17 = smov %s4298_s30  ;;  %s2751_s27 = scalar_lea.hbm %s4298_s30, 256 }
  0x32   : > { %p2752_p7 = scmp.ne.s32.totalorder %s4299_s17, %s2751_s27  ;;  %p2758_p11 = scmp.lt.u32.totalorder %s2751_s27, %s4299_s17 }
  0x34   : > { %p2754_p9 = pnand %p3567_p8, %p2752_p7 }
  0x36   : > { %p2755_p10 = pneg %p2754_p9 }
  0x38   : > { %p2760_p12 = pnand %p2758_p11, %p2755_p10 }
  0x3a   : > { %2763 = shalt.err (!%p2760_p12)
}
  0x3b   : > { %s2764_s18 = scalar_lea.vmem %s3544_s22, 256  ;;  %p2772_p4 = scmp.lt.s32.totalorder %s3544_s22, %s3544_s22 }
  0x3c   : > { %p2765_p13 = scmp.ne.s32.totalorder %s3544_s22, %s2764_s18  ;;  %p2773_p5 = scmp.lt.s32.totalorder %s2764_s18, %s2764_s18 }
  0x3e   : > { %p2767_p0 = pnand %p2765_p13, %p3567_p8  ;;  %p2774_p7 = por %p2773_p5, %p2772_p4 }
  0x40   : > { %p2768_p2 = pneg %p2767_p0 }
  0x42   : > { %p2775_p9 = pnand %p2774_p7, %p2768_p2 }
  0x44   : > { %2778 = shalt.err (!%p2775_p9)
}
  0x45   : > { %s3386_s28 = smov 64   ;;  %s3387_s27 = smov 4  }
  0x46   : > { %2553 = dma.hbm_to_vmem [thread:$0]  (!%p3551_p6), %s4299_s17, 256, %s3544_s22, [#allocation6], %s3386_s28, %s3386_s28, %s3387_s27  }
  0x47   : > { %s4301_s3 = sld [smem:[#allocation55_spill]] }
  0x4d   : > { %s2779_s25 = scalar_lea.hbm %s4301_s3, 256 }
  0x4e   : > { %p2780_p5 = scmp.ne.s32.totalorder %s4301_s3, %s2779_s25  ;;  %p2786_p12 = scmp.lt.u32.totalorder %s2779_s25, %s4301_s3 }
  0x50   : > { %p2782_p10 = pnand %p2780_p5, %p3567_p8 }
  0x52   : > { %p2783_p11 = pneg %p2782_p10 }
  0x54   : > { %p2788_p13 = pnand %p2786_p12, %p2783_p11 }
  0x56   : > { %2791 = shalt.err (!%p2788_p13)
}
  0x57   : > { %s2792_s22 = scalar_lea.vmem %s3555_s24, 256  ;;  %p2800_p7 = scmp.lt.s32.totalorder %s3555_s24, %s3555_s24 }
  0x58   : > { %p2793_p0 = scmp.ne.s32.totalorder %s3555_s24, %s2792_s22  ;;  %p2801_p9 = scmp.lt.s32.totalorder %s2792_s22, %s2792_s22 }
  0x5a   : > { %p2795_p2 = pnand %p2793_p0, %p3567_p8  ;;  %p2802_p5 = por %p2801_p9, %p2800_p7 }
  0x5c   : > { %p2796_p4 = pneg %p2795_p2 }
  0x5e   : > { %p2803_p10 = pnand %p2802_p5, %p2796_p4 }
  0x60   : > { %2806 = shalt.err (!%p2803_p10)
}
  0x61   : > { %2556 = dma.hbm_to_vmem [thread:$0]  (!%p3551_p6), %s4301_s3, 256, %s3555_s24, [#allocation9], %s3386_s28, %s3386_s28, %s3387_s27  }
  0x62   : > { %s4302_s5 = sld [smem:[#allocation57_spill]] }
  0x68   : > { %s2807_s20 = scalar_lea.hbm %s4302_s5, 256 }
  0x69   : > { %p2808_p11 = scmp.ne.s32.totalorder %s4302_s5, %s2807_s20  ;;  %p2814_p0 = scmp.lt.u32.totalorder %s2807_s20, %s4302_s5 }
  0x6b   : > { %p2810_p12 = pnand %p2808_p11, %p3567_p8 }
  0x6d   : > { %p2811_p13 = pneg %p2810_p12 }
  0x6f   : > { %p2816_p2 = pnand %p2814_p0, %p2811_p13 }
  0x71   : > { %2819 = shalt.err (!%p2816_p2)
}
  0x72   : > { %s2820_s22 = scalar_lea.vmem %s532_s26, 256  ;;  %p2828_p5 = scmp.lt.s32.totalorder %s532_s26, %s532_s26 }
  0x73   : > { %p2821_p4 = scmp.ne.s32.totalorder %s532_s26, %s2820_s22  ;;  %p2829_p10 = scmp.lt.s32.totalorder %s2820_s22, %s2820_s22 }
  0x75   : > { %p2823_p7 = pnand %p2821_p4, %p3567_p8  ;;  %p2830_p1 = por %p2829_p10, %p2828_p5 }
  0x77   : > { %p2824_p9 = pneg %p2823_p7 }
  0x79   : > { %p2831_p3 = pnand %p2830_p1, %p2824_p9 }
  0x7b   : > { %2834 = shalt.err (!%p2831_p3)
}
  0x7c   : > { %2562 = dma.hbm_to_vmem [thread:$0]  (!%p3551_p6), %s4302_s5, 256, %s532_s26, [#allocation12], %s3386_s28, %s3386_s28, %s3387_s27  }
  0x7d   : > { %s3388_s0 = smov [#allocation14]   ;;  %s3389_s30 = smov [#allocation17]  }
  0x7e   : > { %s557_s19 = sshll.u32 %s3388_s0, 4  ;;  %s582_s20 = sshll.u32 %s3389_s30, 4  ;;  %s558_s19 = int_to_ptr.vmem [resolvable:$true] %s557_s19  ;;  %s583_s20 = int_to_ptr.vmem [resolvable:$true] %s582_s20 }
  0x7f   : > { %s4303_s7 = sld [smem:[#allocation59_spill]] }
  0x85   : > { %s2835_s25 = scalar_lea.hbm %s4303_s7, 1024 }
  0x86   : > { %p2836_p1 = scmp.ne.s32.totalorder %s4303_s7, %s2835_s25  ;;  %p2842_p12 = scmp.lt.u32.totalorder %s2835_s25, %s4303_s7 }
  0x88   : > { %p2838_p3 = pnand %p2836_p1, %p3567_p8 }
  0x8a   : > { %p2839_p11 = pneg %p2838_p3 }
  0x8c   : > { %p2844_p13 = pnand %p2842_p12, %p2839_p11 }
  0x8e   : > { %2847 = shalt.err (!%p2844_p13)
}
  0x8f   : > { %s2848_s26 = scalar_lea.vmem %s558_s19, 1024  ;;  %p2856_p7 = scmp.lt.s32.totalorder %s558_s19, %s558_s19 }
  0x90   : > { %p2849_p0 = scmp.ne.s32.totalorder %s558_s19, %s2848_s26  ;;  %p2857_p9 = scmp.lt.s32.totalorder %s2848_s26, %s2848_s26 }
  0x92   : > { %p2851_p2 = pnand %p2849_p0, %p3567_p8  ;;  %p2858_p5 = por %p2857_p9, %p2856_p7 }
  0x94   : > { %p2852_p4 = pneg %p2851_p2 }
  0x96   : > { %p2859_p10 = pnand %p2858_p5, %p2852_p4 }
  0x98   : > { %2862 = shalt.err (!%p2859_p10)
}
  0x99   : > { %2568 = dma.hbm_to_vmem [thread:$0]  (!%p3551_p6), %s4303_s7, 1024, %s558_s19, [#allocation15], %s3386_s28, %s3386_s28, %s3387_s27  }
  0x9a   : > { %s4304_s9 = sld [smem:[#allocation61_spill]] }
  0xa0   : > { %s2863_s21 = scalar_lea.hbm %s4304_s9, 16 }
  0xa1   : > { %p2864_p1 = scmp.ne.s32.totalorder %s4304_s9, %s2863_s21  ;;  %p2870_p12 = scmp.lt.u32.totalorder %s2863_s21, %s4304_s9 }
  0xa3   : > { %p2866_p3 = pnand %p2864_p1, %p3567_p8 }
  0xa5   : > { %p2867_p11 = pneg %p2866_p3 }
  0xa7   : > { %p2872_p13 = pnand %p2870_p12, %p2867_p11 }
  0xa9   : > { %2875 = shalt.err (!%p2872_p13)
}
  0xaa   : > { %s2876_s24 = scalar_lea.vmem %s583_s20, 16  ;;  %s2883_s19 = scalar_lea.vmem %s583_s20, 32 }
  0xab   : > { %p2877_p0 = scmp.ne.s32.totalorder %s583_s20, %s2876_s24  ;;  %p2884_p7 = scmp.lt.s32.totalorder %s583_s20, %s583_s20 }
  0xac   : > { %p2885_p9 = scmp.lt.s32.totalorder %s2883_s19, %s2876_s24 }
  0xad   : > { %p2879_p2 = pnand %p2877_p0, %p3567_p8 }
  0xae   : > { %p2886_p5 = por %p2885_p9, %p2884_p7 }
  0xaf   : > { %p2880_p4 = pneg %p2879_p2 }
  0xb1   : > { %p2887_p10 = pnand %p2886_p5, %p2880_p4 }
  0xb3   : > { %2890 = shalt.err (!%p2887_p10)
}
  0xb4   : > { %2574 = dma.hbm_to_vmem [thread:$0]  (!%p3551_p6), %s4304_s9, 16, %s583_s20, [#allocation18]  }
  0xb5   : > { %s3390_s29 = smov [#allocation20]   ;;  %s3391_s30 = smov [#allocation23]  }
  0xb6   : > { %s604_s0 = sshll.u32 %s3390_s29, 4  ;;  %s626_s21 = sshll.u32 %s3391_s30, 4  ;;  %s605_s0 = int_to_ptr.vmem [resolvable:$true] %s604_s0  ;;  %s627_s21 = int_to_ptr.vmem [resolvable:$true] %s626_s21 }
  0xb7   : > { %s4305_s11 = sld [smem:[#allocation63_spill]] }
  0xbd   : > { %s2891_s18 = scalar_lea.hbm %s4305_s11, 16 }
  0xbe   : > { %p2892_p1 = scmp.ne.s32.totalorder %s4305_s11, %s2891_s18  ;;  %p2898_p12 = scmp.lt.u32.totalorder %s2891_s18, %s4305_s11 }
  0xc0   : > { %p2894_p3 = pnand %p2892_p1, %p3567_p8 }
  0xc2   : > { %p2895_p11 = pneg %p2894_p3 }
  0xc4   : > { %p2900_p13 = pnand %p2898_p12, %p2895_p11 }
  0xc6   : > { %2903 = shalt.err (!%p2900_p13)
}
  0xc7   : > { %s2904_s20 = scalar_lea.vmem %s605_s0, 16  ;;  %s2911_s3 = scalar_lea.vmem %s605_s0, 32 }
  0xc8   : > { %p2905_p0 = scmp.ne.s32.totalorder %s605_s0, %s2904_s20  ;;  %p2912_p7 = scmp.lt.s32.totalorder %s605_s0, %s605_s0 }
  0xc9   : > { %p2913_p9 = scmp.lt.s32.totalorder %s2911_s3, %s2904_s20 }
  0xca   : > { %p2907_p2 = pnand %p2905_p0, %p3567_p8 }
  0xcb   : > { %p2914_p5 = por %p2913_p9, %p2912_p7 }
  0xcc   : > { %p2908_p4 = pneg %p2907_p2 }
  0xce   : > { %p2915_p10 = pnand %p2914_p5, %p2908_p4 }
  0xd0   : > { %2918 = shalt.err (!%p2915_p10)
}
  0xd1   : > { %2580 = dma.hbm_to_vmem [thread:$0]  (!%p3551_p6), %s4305_s11, 16, %s605_s0, [#allocation21]  }
  0xd2   : > { %s2919_s18 = scalar_lea.hbm %s4248_s13, 16 }
  0xd3   : > { %p2920_p1 = scmp.ne.s32.totalorder %s4248_s13, %s2919_s18  ;;  %p2926_p12 = scmp.lt.u32.totalorder %s2919_s18, %s4248_s13 }
  0xd5   : > { %p2922_p3 = pnand %p2920_p1, %p3567_p8 }
  0xd7   : > { %p2923_p11 = pneg %p2922_p3 }
  0xd9   : > { %p2928_p13 = pnand %p2926_p12, %p2923_p11 }
  0xdb   : > { %2931 = shalt.err (!%p2928_p13)
}
  0xdc   : > { %s2932_s20 = scalar_lea.vmem %s627_s21, 16  ;;  %s2939_s0 = scalar_lea.vmem %s627_s21, 32 }
  0xdd   : > { %p2933_p0 = scmp.ne.s32.totalorder %s627_s21, %s2932_s20  ;;  %p2940_p7 = scmp.lt.s32.totalorder %s627_s21, %s627_s21 }
  0xde   : > { %p2941_p9 = scmp.lt.s32.totalorder %s2939_s0, %s2932_s20 }
  0xdf   : > { %p2935_p2 = pnand %p2933_p0, %p3567_p8 }
  0xe0   : > { %p2942_p5 = por %p2941_p9, %p2940_p7 }
  0xe1   : > { %p2936_p4 = pneg %p2935_p2 }
  0xe3   : > { %p2943_p10 = pnand %p2942_p5, %p2936_p4 }
  0xe5   : > { %2946 = shalt.err (!%p2943_p10)
}
  0xe6   : > { %2586 = dma.hbm_to_vmem [thread:$0]  (!%p3551_p6), %s4248_s13, 16, %s627_s21, [#allocation24]  }
  0xe7   : > { %s3392_s30 = smov [#allocation26]   ;;  %s3393_s25 = smov [#allocation10]  }
  0xe8   : > { %s648_s23 = sshll.u32 %s3392_s30, 4  ;;  %s518_s18 = sshll.u32 %s3393_s25, 4  ;;  %s649_s23 = int_to_ptr.vmem [resolvable:$true] %s648_s23  ;;  %s519_s18 = int_to_ptr.vmem [resolvable:$true] %s518_s18 }
  0xe9   : > { %s2947_s19 = scalar_lea.hbm %s4250_s15, 16 }
  0xea   : > { %p2948_p1 = scmp.ne.s32.totalorder %s4250_s15, %s2947_s19  ;;  %p2954_p12 = scmp.lt.u32.totalorder %s2947_s19, %s4250_s15 }
  0xec   : > { %p2950_p3 = pnand %p2948_p1, %p3567_p8 }
  0xee   : > { %p2951_p11 = pneg %p2950_p3 }
  0xf0   : > { %p2956_p13 = pnand %p2954_p12, %p2951_p11 }
  0xf2   : > { %2959 = shalt.err (!%p2956_p13)
}
  0xf3   : > { %s2960_s21 = scalar_lea.vmem %s649_s23, 16  ;;  %s2967_s29 = scalar_lea.vmem %s649_s23, 32 }
  0xf4   : > { %p2961_p0 = scmp.ne.s32.totalorder %s649_s23, %s2960_s21  ;;  %p2968_p7 = scmp.lt.s32.totalorder %s649_s23, %s649_s23 }
  0xf5   : > { %p2969_p9 = scmp.lt.s32.totalorder %s2967_s29, %s2960_s21 }
  0xf6   : > { %p2963_p2 = pnand %p2961_p0, %p3567_p8 }
  0xf7   : > { %p2970_p5 = por %p2969_p9, %p2968_p7 }
  0xf8   : > { %p2964_p4 = pneg %p2963_p2 }
  0xfa   : > { %p2971_p10 = pnand %p2970_p5, %p2964_p4 }
  0xfc   : > { %2974 = shalt.err (!%p2971_p10)
}
  0xfd   : > { %2592 = dma.hbm_to_vmem [thread:$0]  (!%p3551_p6), %s4250_s15, 16, %s649_s23, [#allocation27]  }
  0xfe   : > { %s4306_s4 = sld [smem:[#allocation56_spill]] }
 0x104   : > { %s2975_s19 = scalar_lea.hbm %s4306_s4, 256 }
 0x105   : > { %p2976_p1 = scmp.ne.s32.totalorder %s4306_s4, %s2975_s19  ;;  %p2982_p12 = scmp.lt.u32.totalorder %s2975_s19, %s4306_s4 }
 0x107   : > { %p2978_p3 = pnand %p2976_p1, %p3567_p8 }
 0x109   : > { %p2979_p11 = pneg %p2978_p3 }
 0x10b   : > { %p2984_p13 = pnand %p2982_p12, %p2979_p11 }
 0x10d   : > { %2987 = shalt.err (!%p2984_p13)
}
 0x10e   : > { %s2988_s21 = scalar_lea.vmem %s519_s18, 256  ;;  %p2996_p7 = scmp.lt.s32.totalorder %s519_s18, %s519_s18 }
 0x10f   : > { %p2989_p0 = scmp.ne.s32.totalorder %s519_s18, %s2988_s21  ;;  %p2997_p9 = scmp.lt.s32.totalorder %s2988_s21, %s2988_s21 }
 0x111   : > { %p2991_p2 = pnand %p2989_p0, %p3567_p8  ;;  %p2998_p5 = por %p2997_p9, %p2996_p7 }
 0x113   : > { %p2992_p4 = pneg %p2991_p2 }
 0x115   : > { %p2999_p10 = pnand %p2998_p5, %p2992_p4 }
 0x117   : > { %3002 = shalt.err (!%p2999_p10)
}
 0x118   : > { %2559 = dma.hbm_to_vmem [thread:$0]  (!%p3551_p6), %s4306_s4, 256, %s519_s18, [#allocation9], %s3386_s28, %s3386_s28, %s3387_s27  }
 0x119   : > { %s3394_s30 = smov [#allocation13]   ;;  %s3395_s22 = smov [#allocation16]  }
 0x11a   : > { %s544_s25 = sshll.u32 %s3394_s30, 4  ;;  %s571_s24 = sshll.u32 %s3395_s22, 4  ;;  %s545_s25 = int_to_ptr.vmem [resolvable:$true] %s544_s25  ;;  %s572_s24 = int_to_ptr.vmem [resolvable:$true] %s571_s24 }
 0x11b   : > { %s4307_s6 = sld [smem:[#allocation58_spill]] }
 0x121   : > { %s3003_s20 = scalar_lea.hbm %s4307_s6, 256 }
 0x122   : > { %p3004_p1 = scmp.ne.s32.totalorder %s4307_s6, %s3003_s20  ;;  %p3010_p12 = scmp.lt.u32.totalorder %s3003_s20, %s4307_s6 }
 0x124   : > { %p3006_p3 = pnand %p3004_p1, %p3567_p8 }
 0x126   : > { %p3007_p11 = pneg %p3006_p3 }
 0x128   : > { %p3012_p13 = pnand %p3010_p12, %p3007_p11 }
 0x12a   : > { %3015 = shalt.err (!%p3012_p13)
}
 0x12b   : > { %s3016_s18 = scalar_lea.vmem %s545_s25, 256  ;;  %p3024_p7 = scmp.lt.s32.totalorder %s545_s25, %s545_s25 }
 0x12c   : > { %p3017_p0 = scmp.ne.s32.totalorder %s545_s25, %s3016_s18  ;;  %p3025_p9 = scmp.lt.s32.totalorder %s3016_s18, %s3016_s18 }
 0x12e   : > { %p3019_p2 = pnand %p3017_p0, %p3567_p8  ;;  %p3026_p5 = por %p3025_p9, %p3024_p7 }
 0x130   : > { %p3020_p4 = pneg %p3019_p2 }
 0x132   : > { %p3027_p10 = pnand %p3026_p5, %p3020_p4 }
 0x134   : > { %3030 = shalt.err (!%p3027_p10)
}
 0x135   : > { %2565 = dma.hbm_to_vmem [thread:$0]  (!%p3551_p6), %s4307_s6, 256, %s545_s25, [#allocation12], %s3386_s28, %s3386_s28, %s3387_s27  }
 0x136   : > { %s4308_s8 = sld [smem:[#allocation60_spill]] }
 0x13c   : > { %s3031_s26 = scalar_lea.hbm %s4308_s8, 16 }
 0x13d   : > { %p3032_p1 = scmp.ne.s32.totalorder %s4308_s8, %s3031_s26  ;;  %p3038_p12 = scmp.lt.u32.totalorder %s3031_s26, %s4308_s8 }
 0x13f   : > { %p3034_p3 = pnand %p3032_p1, %p3567_p8 }
 0x141   : > { %p3035_p11 = pneg %p3034_p3 }
 0x143   : > { %p3040_p13 = pnand %p3038_p12, %p3035_p11 }
 0x145   : > { %3043 = shalt.err (!%p3040_p13)
}
 0x146   : > { %s3044_s23 = scalar_lea.vmem %s572_s24, 16  ;;  %s3051_s28 = scalar_lea.vmem %s572_s24, 32 }
 0x147   : > { %p3045_p0 = scmp.ne.s32.totalorder %s572_s24, %s3044_s23  ;;  %p3052_p7 = scmp.lt.s32.totalorder %s572_s24, %s572_s24 }
 0x148   : > { %p3053_p9 = scmp.lt.s32.totalorder %s3051_s28, %s3044_s23 }
 0x149   : > { %p3047_p2 = pnand %p3045_p0, %p3567_p8 }
 0x14a   : > { %p3054_p5 = por %p3053_p9, %p3052_p7 }
 0x14b   : > { %p3048_p4 = pneg %p3047_p2 }
 0x14d   : > { %p3055_p10 = pnand %p3054_p5, %p3048_p4 }
 0x14f   : > { %3058 = shalt.err (!%p3055_p10)
}
 0x150   : > { %2571 = dma.hbm_to_vmem [thread:$0]  (!%p3551_p6), %s4308_s8, 16, %s572_s24, [#allocation15]  }
 0x151   : > { %s3396_s18 = smov [#allocation19]   ;;  %s3397_s30 = smov [#allocation22]  }
 0x152   : > { %s593_s29 = sshll.u32 %s3396_s18, 4  ;;  %s615_s22 = sshll.u32 %s3397_s30, 4  ;;  %s594_s29 = int_to_ptr.vmem [resolvable:$true] %s593_s29  ;;  %s616_s22 = int_to_ptr.vmem [resolvable:$true] %s615_s22 }
 0x153   : > { %s4309_s10 = sld [smem:[#allocation62_spill]] }
 0x159   : > { %s3059_s20 = scalar_lea.hbm %s4309_s10, 16 }
 0x15a   : > { %p3060_p1 = scmp.ne.s32.totalorder %s4309_s10, %s3059_s20  ;;  %p3066_p12 = scmp.lt.u32.totalorder %s3059_s20, %s4309_s10 }
 0x15c   : > { %p3062_p3 = pnand %p3060_p1, %p3567_p8 }
 0x15e   : > { %p3063_p11 = pneg %p3062_p3 }
 0x160   : > { %p3068_p13 = pnand %p3066_p12, %p3063_p11 }
 0x162   : > { %3071 = shalt.err (!%p3068_p13)
}
 0x163   : > { %s3072_s24 = scalar_lea.vmem %s594_s29, 16  ;;  %s3079_s28 = scalar_lea.vmem %s594_s29, 32 }
 0x164   : > { %p3073_p0 = scmp.ne.s32.totalorder %s594_s29, %s3072_s24  ;;  %p3080_p7 = scmp.lt.s32.totalorder %s594_s29, %s594_s29 }
 0x165   : > { %p3081_p9 = scmp.lt.s32.totalorder %s3079_s28, %s3072_s24 }
 0x166   : > { %p3075_p2 = pnand %p3073_p0, %p3567_p8 }
 0x167   : > { %p3082_p5 = por %p3081_p9, %p3080_p7 }
 0x168   : > { %p3076_p4 = pneg %p3075_p2 }
 0x16a   : > { %p3083_p10 = pnand %p3082_p5, %p3076_p4 }
 0x16c   : > { %3086 = shalt.err (!%p3083_p10)
}
 0x16d   : > { %2577 = dma.hbm_to_vmem [thread:$0]  (!%p3551_p6), %s4309_s10, 16, %s594_s29, [#allocation18]  }
 0x16e   : > { %s4310_s12 = sld [smem:[#allocation64_spill]] }
 0x174   : > { %s3087_s19 = scalar_lea.hbm %s4310_s12, 16 }
 0x175   : > { %p3088_p1 = scmp.ne.s32.totalorder %s4310_s12, %s3087_s19  ;;  %p3094_p12 = scmp.lt.u32.totalorder %s3087_s19, %s4310_s12 }
 0x177   : > { %p3090_p3 = pnand %p3088_p1, %p3567_p8 }
 0x179   : > { %p3091_p11 = pneg %p3090_p3 }
 0x17b   : > { %p3096_p13 = pnand %p3094_p12, %p3091_p11 }
 0x17d   : > { %3099 = shalt.err (!%p3096_p13)
}
 0x17e   : > { %s3100_s21 = scalar_lea.vmem %s616_s22, 16  ;;  %s3107_s29 = scalar_lea.vmem %s616_s22, 32 }
 0x17f   : > { %p3101_p0 = scmp.ne.s32.totalorder %s616_s22, %s3100_s21  ;;  %p3108_p7 = scmp.lt.s32.totalorder %s616_s22, %s616_s22 }
 0x180   : > { %p3109_p9 = scmp.lt.s32.totalorder %s3107_s29, %s3100_s21 }
 0x181   : > { %p3103_p2 = pnand %p3101_p0, %p3567_p8 }
 0x182   : > { %p3110_p5 = por %p3109_p9, %p3108_p7 }
 0x183   : > { %p3104_p4 = pneg %p3103_p2 }
 0x185   : > { %p3111_p10 = pnand %p3110_p5, %p3104_p4 }
 0x187   : > { %3114 = shalt.err (!%p3111_p10)
}
 0x188   : > { %2583 = dma.hbm_to_vmem [thread:$0]  (!%p3551_p6), %s4310_s12, 16, %s616_s22, [#allocation21]  }
 0x189   : > { %s3398_s28 = smov [#allocation25]   ;;  %s3399_s25 = smov [#allocation28]  }
 0x18a   : > { %s637_s27 = sshll.u32 %s3398_s28, 4  ;;  %s659_s18 = sshll.u32 %s3399_s25, 4  ;;  %s638_s27 = int_to_ptr.vmem [resolvable:$true] %s637_s27  ;;  %s660_s18 = int_to_ptr.vmem [resolvable:$true] %s659_s18 }
 0x18b   : > { %s3115_s26 = scalar_lea.hbm %s4249_s14, 16 }
 0x18c   : > { %p3116_p1 = scmp.ne.s32.totalorder %s4249_s14, %s3115_s26  ;;  %p3122_p12 = scmp.lt.u32.totalorder %s3115_s26, %s4249_s14 }
 0x18e   : > { %p3118_p3 = pnand %p3116_p1, %p3567_p8 }
 0x190   : > { %p3119_p11 = pneg %p3118_p3 }
 0x192   : > { %p3124_p13 = pnand %p3122_p12, %p3119_p11 }
 0x194   : > { %3127 = shalt.err (!%p3124_p13)
}
 0x195   : > { %s3128_s22 = scalar_lea.vmem %s638_s27, 16  ;;  %s3135_s29 = scalar_lea.vmem %s638_s27, 32 }
 0x196   : > { %p3129_p0 = scmp.ne.s32.totalorder %s638_s27, %s3128_s22  ;;  %p3136_p7 = scmp.lt.s32.totalorder %s638_s27, %s638_s27 }
 0x197   : > { %p3137_p9 = scmp.lt.s32.totalorder %s3135_s29, %s3128_s22 }
 0x198   : > { %p3131_p2 = pnand %p3129_p0, %p3567_p8 }
 0x199   : > { %p3138_p5 = por %p3137_p9, %p3136_p7 }
 0x19a   : > { %p3132_p4 = pneg %p3131_p2 }
 0x19c   : > { %p3139_p10 = pnand %p3138_p5, %p3132_p4 }
 0x19e   : > { %3142 = shalt.err (!%p3139_p10)
}
 0x19f   : > { %2589 = dma.hbm_to_vmem [thread:$0]  (!%p3551_p6), %s4249_s14, 16, %s638_s27, [#allocation24]  }
 0x1a0   : > { %s3143_s30 = scalar_lea.hbm %s4251_s16, 16 }
 0x1a1   : > { %p3144_p1 = scmp.ne.s32.totalorder %s4251_s16, %s3143_s30  ;;  %p3150_p12 = scmp.lt.u32.totalorder %s3143_s30, %s4251_s16 }
 0x1a3   : > { %p3146_p3 = pnand %p3144_p1, %p3567_p8 }
 0x1a5   : > { %p3147_p11 = pneg %p3146_p3 }
 0x1a7   : > { %p3152_p13 = pnand %p3150_p12, %p3147_p11 }
 0x1a9   : > { %3155 = shalt.err (!%p3152_p13)
}
 0x1aa   : > { %s3156_s3 = scalar_lea.vmem %s660_s18, 16  ;;  %s3163_s27 = scalar_lea.vmem %s660_s18, 32 }
 0x1ab   : > { %p3157_p0 = scmp.ne.s32.totalorder %s660_s18, %s3156_s3  ;;  %p3164_p7 = scmp.lt.s32.totalorder %s660_s18, %s660_s18 }
 0x1ac   : > { %p3165_p9 = scmp.lt.s32.totalorder %s3163_s27, %s3156_s3 }
 0x1ad   : > { %p3159_p2 = pnand %p3157_p0, %p3567_p8 }
 0x1ae   : > { %p3166_p5 = por %p3165_p9, %p3164_p7 }
 0x1af   : > { %p3160_p4 = pneg %p3159_p2 }
 0x1b1   : > { %p3167_p10 = pnand %p3166_p5, %p3160_p4 }
 0x1b3   : > { %3170 = shalt.err (!%p3167_p10)
}
 0x1b4   : > { %2595 = dma.hbm_to_vmem [thread:$0]  (!%p3551_p6), %s4251_s16, 16, %s660_s18, [#allocation27]  }
 0x1b5   : > { %s3400_s29 = smov [#allocation29]   ;;  %s4311_s25 = sld [smem:[#allocation65_spill]] }
 0x1b6   : > { %s670_s23 = sshll.u32 %s3400_s29, 4  ;;  %s671_s23 = int_to_ptr.vmem [resolvable:$true] %s670_s23 }
 0x1bb   : > { %s3171_s30 = scalar_lea.hbm %s4311_s25, 16 }
 0x1bc   : > { %p3172_p1 = scmp.ne.s32.totalorder %s4311_s25, %s3171_s30  ;;  %p3178_p12 = scmp.lt.u32.totalorder %s3171_s30, %s4311_s25 }
 0x1be   : > { %p3174_p3 = pnand %p3172_p1, %p3567_p8 }
 0x1c0   : > { %p3175_p11 = pneg %p3174_p3 }
 0x1c2   : > { %p3180_p13 = pnand %p3178_p12, %p3175_p11 }
 0x1c4   : > { %3183 = shalt.err (!%p3180_p13)
}
 0x1c5   : > { %s3184_s18 = scalar_lea.vmem %s671_s23, 16  ;;  %s3191_s3 = scalar_lea.vmem %s671_s23, 32 }
 0x1c6   : > { %p3185_p0 = scmp.ne.s32.totalorder %s671_s23, %s3184_s18  ;;  %p3192_p7 = scmp.lt.s32.totalorder %s671_s23, %s671_s23 }
 0x1c7   : > { %p3193_p9 = scmp.lt.s32.totalorder %s3191_s3, %s3184_s18 }
 0x1c8   : > { %p3187_p2 = pnand %p3185_p0, %p3567_p8 }
 0x1c9   : > { %p3194_p5 = por %p3193_p9, %p3192_p7 }
 0x1ca   : > { %p3188_p4 = pneg %p3187_p2 }
 0x1cc   : > { %p3195_p10 = pnand %p3194_p5, %p3188_p4 }
 0x1ce   : > { %3198 = shalt.err (!%p3195_p10)
}
 0x1cf   : > { %s4312_s22 = sld [smem:[#allocation49_spill]]  ;;  %s4313_s29 = sld [smem:[#allocation48_spill]] }
 0x1d0   : > { %s4314_s24 = sld [smem:[#allocation46_spill]]  ;;  %s4315_s28 = sld [smem:[#allocation45_spill]] }
 0x1d1   : > { %s4316_s1 = sld [smem:[#allocation44_spill]]  ;;  %s4317_s30 = sld [smem:[#allocation50_spill]] }
 0x1d2   : > { %2598 = dma.hbm_to_vmem [thread:$0]  (!%p3551_p6), %s4311_s25, 16, %s671_s23, [#allocation30]  }
 0x1d3   : > { %s4323_s4 = sld [smem:[#allocation52_spill]] }
 0x1d5   : > { %s2222_s19 = sadd.s32 4294967294, %s4312_s22   ;;  %s57_s26 = sadd.s32 1, %s4313_s29 }
 0x1d6   : > { %p59_p8 = scmp.ge.s32.totalorder %s57_s26, 2  ;;  %s66_s2 = sadd.s32 1, %s4314_s24 }
 0x1d7   : > { %p73_p1 = scmp.ne.s32.totalorder %s4314_s24, %s4315_s28  ;;  %p74_p3 = scmp.eq.s32.totalorder %s4312_s22, 0 }
 0x1d8   : > { %s4363_s26 = smov (%p59_p8, %s57_s26), 0  ;;  %p79_p12 = scmp.ne.s32.totalorder %s4315_s28, %s4316_s1 }
 0x1d9   : > { %p3890_p11 = por %p74_p3, %p73_p1  ;;  %s61_s23 = ssub.s32 %s4313_s29, %s4363_s26 }
 0x1da   : > { %p467_p6 = scmp.eq.s32.totalorder %s4317_s30, 1  ;;  %p64_p13 = scmp.eq.s32.totalorder %s61_s23, 0 }
 0x1db   : > { %p4319_p0 = scmp.eq.s32.totalorder %s4317_s30, 0  ;;  %p473_p7 = scmp.eq.s32.totalorder %s2222_s19, 1 }
 0x1dc   : > { %p3905_p4 = por %p467_p6, %p73_p1  ;;  %p2626_p5 = scmp.lt.s32.totalorder %s4312_s22, 2 }
 0x1dd   : > { %p3901_p2 = por %p4319_p0, %p79_p12  ;;  %p3912_p9 = por %p473_p7, %p79_p12 }
 0x1de   : > { %s4321_s18 = scalar_select %p3905_p4, 1, 0 }
 0x1df   : > { %s4320_s0 = scalar_select %p3901_p2, 1, 0 }
 0x1e0   : > { %s3910_s3 = scalar_select %p64_p13, %s4314_s24, %s66_s2  }
 0x1e1   : > { %s4322_s27 = scalar_select %p3912_p9, 1, 0 }
 0x1e2   : > { %s681_s21 = sand.u32 1, %s4314_s24   ;;  %s2242_s28 = sshll.u32 %s4313_s29, 7 }
 0x1e3   : > { %s3919_s1 = sshll.u32 %s681_s21, 3  ;;  %s3924_s5 = scalar_lea.hbm %s4323_s4, %s2242_s28 }
 0x1e4   : > { %s685_s19 = scalar_lea.vmem [#allocation2], %s3919_s1  ;;  %p3929_p10 = pnand %p2626_p5, %p3890_p11 }
 0x1e5   : > { %s693_s2 = sshll.u32 %s685_s19, 4  ;;  %s4325_s30 = sld [smem:[#allocation53_spill]]  ;;  %s3933_s2 = int_to_ptr.vmem [resolvable:$true] %s693_s2 }
 0x1e6   : > { %s682_s8 = scalar_lea.sflag [#allocation3], %s681_s21  ;;  %s3199_s9 = scalar_lea.hbm %s3924_s5, 128 }
 0x1e7   : > { %p3200_p8 = scmp.ne.s32.totalorder %s3924_s5, %s3199_s9  ;;  %p3201_p1 = pneg %p3929_p10 }
 0x1e8   : > { %s3204_s10 = scalar_lea.hbm %s4323_s4, 256  ;;  %p3205_p12 = scmp.lt.u32.totalorder %s3924_s5, %s4323_s4 }
 0x1e9   : > { %p3202_p3 = pnand %p3201_p1, %p3200_p8  ;;  %p3206_p6 = scmp.lt.u32.totalorder %s3204_s10, %s3199_s9 }
 0x1ea   : > { %p3208_p0 = scmp.lt.u32.totalorder %s3199_s9, %s3924_s5 }
 0x1eb   : > { %s4326_s23 = smov %s4325_s30  ;;  %s3938_s7 = scalar_lea.hbm %s4325_s30, %s2242_s28 }
 0x1ec   : > { %p3203_p11 = pneg %p3202_p3  ;;  %p3207_p13 = por %p3206_p6, %p3205_p12 }
 0x1ee   : > { %p3209_p7 = por %p3208_p0, %p3207_p13 }
 0x1f0   : > { %p3210_p5 = pnand %p3209_p7, %p3203_p11 }
 0x1f2   : > { %3213 = shalt.err (!%p3210_p5)
}
 0x1f3   : > { %s3214_s21 = scalar_lea.vmem %s3933_s2, 128  ;;  %s3401_s28 = smov [#allocation2]  }
 0x1f4   : > { %p3215_p8 = scmp.ne.s32.totalorder %s3933_s2, %s3214_s21  ;;  %s3219_s29 = sshll.u32 %s3401_s28, 4  ;;  %s3220_s29 = int_to_ptr.vmem [resolvable:$false] %s3219_s29 }
 0x1f5   : > { %s3221_s11 = scalar_lea.vmem %s3220_s29, 256  ;;  %p3222_p4 = scmp.lt.s32.totalorder %s3933_s2, %s3220_s29 }
 0x1f6   : > { %p3217_p3 = pnand %p3215_p8, %p3201_p1  ;;  %p3223_p12 = scmp.lt.s32.totalorder %s3221_s11, %s3214_s21 }
 0x1f8   : > { %p3218_p9 = pneg %p3217_p3  ;;  %p3224_p6 = por %p3223_p12, %p3222_p4 }
 0x1fa   : > { %p3225_p13 = pnand %p3224_p6, %p3218_p9 }
 0x1fc   : > { %3228 = shalt.err (!%p3225_p13)
}
 0x1fd   : > { %2602 = dma.hbm_to_vmem [thread:$0]  (!%p3929_p10), %s3924_s5, 128, %s3933_s2, %s682_s8  }
 0x1fe   : > { %s700_s9 = sand.u32 1, %s4312_s22   ;;  %s704_s10 = scalar_lea.vmem [#allocation5], %s3919_s1 }
 0x1ff   : > { %s711_s12 = sshll.u32 %s704_s10, 4  ;;  %s701_s24 = scalar_lea.sflag [#allocation6], %s700_s9  ;;  %s712_s12 = int_to_ptr.vmem [resolvable:$true] %s711_s12 }
 0x200   : > { %s3229_s30 = scalar_lea.hbm %s3938_s7, 128  ;;  %s3234_s21 = scalar_lea.hbm %s4326_s23, 256 }
 0x201   : > { %p3230_p4 = scmp.ne.s32.totalorder %s3938_s7, %s3229_s30  ;;  %p3235_p0 = scmp.lt.u32.totalorder %s3938_s7, %s4326_s23 }
 0x202   : > { %p3236_p7 = scmp.lt.u32.totalorder %s3234_s21, %s3229_s30  ;;  %p3238_p8 = scmp.lt.u32.totalorder %s3229_s30, %s3938_s7 }
 0x203   : > { %p3232_p9 = pnand %p3230_p4, %p3201_p1 }
 0x204   : > { %p3237_p5 = por %p3236_p7, %p3235_p0 }
 0x205   : > { %p3233_p11 = pneg %p3232_p9 }
 0x206   : > { %p3239_p3 = por %p3238_p8, %p3237_p5 }
 0x208   : > { %p3240_p12 = pnand %p3239_p3, %p3233_p11 }
 0x20a   : > { %3243 = shalt.err (!%p3240_p12)
}
 0x20b   : > { %s3244_s5 = scalar_lea.vmem %s712_s12, 128  ;;  %s3402_s8 = smov [#allocation5]  }
 0x20c   : > { %p3245_p6 = scmp.ne.s32.totalorder %s712_s12, %s3244_s5  ;;  %s3249_s22 = sshll.u32 %s3402_s8, 4  ;;  %s3250_s22 = int_to_ptr.vmem [resolvable:$false] %s3249_s22 }
 0x20d   : > { %s3251_s1 = scalar_lea.vmem %s3250_s22, 256  ;;  %p3252_p9 = scmp.lt.s32.totalorder %s712_s12, %s3250_s22 }
 0x20e   : > { %p3247_p13 = pnand %p3245_p6, %p3201_p1  ;;  %p3253_p2 = scmp.lt.s32.totalorder %s3251_s1, %s3244_s5 }
 0x210   : > { %p3248_p4 = pneg %p3247_p13  ;;  %p3254_p0 = por %p3253_p2, %p3252_p9 }
 0x212   : > { %p3255_p7 = pnand %p3254_p0, %p3248_p4 }
 0x214   : > { %3258 = shalt.err (!%p3255_p7)
}
 0x215   : > { %2605 = dma.hbm_to_vmem [thread:$0]  (!%p3929_p10), %s3938_s7, 128, %s712_s12, %s701_s24  }
 0x216   : > { %s4327_s2 = sld [smem:[#allocation51_spill]] }
 0x21c   : > { %p4328_p11 = scmp.ne.s32.totalorder %s4327_s2, 0 }
 0x21d   : > { %s4329_s11 = sld [smem:[#allocation45_spill]] (!%p4328_p11)  ;;  %p4330_p2 = scmp.ne.s32.totalorder (!%p4328_p11), %s4320_s0, 0 }
 0x21e   : > { %720 = sbr.rel (%p4328_p11) target bundleno = 4273 (0x10b1), region = 92 }
 0x223   : > { %s3989_s9 = sand.u32 (!%p4328_p11), 1, %s4329_s11  }
 0x224   : > { %s3992_s10 = sshll.u32 (!%p4328_p11), %s3989_s9, 3  ;;  %s723_s30 = scalar_lea.sflag (!%p4328_p11), [#allocation3], %s3989_s9 }
 0x225   : > { %s726_s20 = scalar_lea.vmem [#allocation2], %s3992_s10 }
 0x226   : > { %3312 = dma.done.wait (%p4330_p2), %s723_s30, 128  }
 0x227   : > { %3314 = vsyncadd (%p4330_p2), %s723_s30, 4294967168  ;;  %s4331_s6 = sld [smem:[#allocation50_spill]]  ;;  %s735_s24 = scalar_lea.vmem [#allocation5], %s3992_s10 }
 0x22d   : > { %s731_s7 = sand.u32 1, %s4331_s6  }
 0x22e   : > { %s732_s12 = scalar_lea.sflag [#allocation6], %s731_s7 }
 0x22f   : > { %3316 = dma.done.wait (%p4330_p2), %s732_s12, 128  }
 0x230   : > { %3318 = vsyncadd (%p4330_p2), %s732_s12, 4294967168  ;;  %p4332_p10 = scmp.eq.s32.totalorder %s4331_s6, 0 }
 0x232   : > { %3320 = dma.done.wait (%p4332_p10), [#allocation6], 256   ;;  %p4333_p1 = pmov %p4332_p10 }
 0x234   : > { %3322 = vsyncadd (%p4333_p1), [#allocation6], 4294967040  ;;  %p4334_p5 = pmov %p4333_p1 }
 0x235   : > { %p4335_p8 = pmov %p4333_p1 }
 0x236   : > { %3324 = dma.done.wait (%p4334_p5), [#allocation9], 512  }
 0x237   : > { %3326 = vsyncadd (%p4335_p8), [#allocation9], 4294966784  ;;  %p4336_p3 = pmov %p4333_p1 }
 0x238   : > { %p4337_p12 = pmov %p4333_p1 }
 0x239   : > { %3328 = dma.done.wait (%p4336_p3), [#allocation12], 512  }
 0x23a   : > { %3330 = vsyncadd (%p4337_p12), [#allocation12], 4294966784  ;;  %p4338_p6 = pmov %p4333_p1 }
 0x23b   : > { %p4339_p13 = pmov %p4333_p1 }
 0x23c   : > { %3332 = dma.done.wait (%p4338_p6), [#allocation15], 1040  }
 0x23d   : > { %3334 = vsyncadd (%p4339_p13), [#allocation15], 4294966256  ;;  %p4340_p4 = pmov %p4333_p1 }
 0x23e   : > { %p4341_p9 = pmov %p4333_p1 }
 0x23f   : > { %3336 = dma.done.wait (%p4340_p4), [#allocation18], 32  }
 0x240   : > { %3338 = vsyncadd (%p4341_p9), [#allocation18], 4294967264  ;;  %p4342_p0 = pmov %p4333_p1 }
 0x242   : > { %3340 = dma.done.wait (%p4342_p0), [#allocation21], 32   ;;  %p4343_p7 = pmov %p4342_p0 }
 0x243   : > { %p4344_p11 = pmov %p4342_p0 }
 0x244   : > { %3342 = vsyncadd (%p4343_p7), [#allocation21], 4294967264 }
 0x245   : > { %3344 = dma.done.wait (%p4344_p11), [#allocation24], 32   ;;  %p4345_p2 = pmov %p4342_p0 }
 0x246   : > { %p4346_p10 = pmov %p4342_p0 }
 0x247   : > { %3346 = vsyncadd (%p4345_p2), [#allocation24], 4294967264 }
 0x248   : > { %3348 = dma.done.wait (%p4346_p10), [#allocation27], 32   ;;  %p4347_p1 = pmov %p4342_p0 }
 0x249   : > { %p4348_p5 = pmov %p4342_p0 }
 0x24a   : > { %3350 = vsyncadd (%p4347_p1), [#allocation27], 4294967264 }
 0x24b   : > { %3352 = dma.done.wait (%p4348_p5), [#allocation30], 16   ;;  %p4349_p8 = pmov %p4342_p0 }
 0x24c   : > { %v3403_v0 = vmov 0.0   ;;  %vm3404_vm0 = vmmov 0   ;;  %v2715_v1 = vld [vmem:[#allocation7] sm:$0xff]   ;;  %v2716_v2 = vld [vmem:[#allocation7 + $0x8] sm:$0xff]   ;;  %vm884_vm1 = vcmask 261120   ;;  %v2717_v4 = vld [vmem:[#allocation8] sm:$0xff]  }
 0x24d   : > { %3354 = vsyncadd (%p4349_p8), [#allocation30], 4294967280  ;;  %2356 = vmatprep.subr.bf16.mxu1 %v3403_v0  ;;  %2360 = vmatprep.mubr.msk.bf16.mxu1 %vm3404_vm0, %v3403_v0  ;;  %v4050_v3 = vld [vmem:[%s726_s20] sm:$0xff]  ;;  %v2718_v6 = vld [vmem:[#allocation8 + $0x8] sm:$0xff]   ;;  %vm1061_vm2 = vcmask 64512   ;;  %s3405_s0 = smov 120  }
 0x24e   : > { %2386 = vmatprep.subr.bf16.mxu0 %v3403_v0  ;;  %2388 = vmatprep.mubr.msk.bf16.mxu0 %vm3404_vm0, %v3403_v0  ;;  %v860_v5 = vpack.c.bf16 %v4050_v3, %v4050_v3  ;;  %v859_v7 = vld [vmem:[%s735_s24] sm:$0xff]  ;;  %v2719_v9 = vld [vmem:[#allocation10] sm:$0xff]   ;;  %v2720_v10 = vld [vmem:[#allocation10 + $0x8] sm:$0xff]   ;;  %vm1124_vm3 = vcmask 1043456   ;;  %s3406_s19 = smov 112   ;;  %s3407_s21 = smov 104  }
 0x24f   : > { %2357 = vmatpush3.bf16.msra.mxu1 %v2715_v1  ;;  %v928_v8 = vpack.c.bf16 %v859_v7, %v859_v7  ;;  %v2269_v15 = vld [vmem:[#allocation17] ss:$0 sm:$0xff]  ;;  %v2265_v16 = vld [vmem:[#allocation16] ss:$0 sm:$0xff]  ;;  %v2273_v30 = vld [vmem:[#allocation19] ss:$0 sm:$0xff] }
 0x250   : > { %2358 = vmatprep.subr.bf16.mxu1 %v3403_v0  ;;  %v1286_v63 = vld [vmem:[#allocation11 + $0x4] sm:$0xf]  ;;  %v1169_v7 = vld [vmem:[#allocation11] sm:$0xf]  ;;  %s4350_s28 = sld [smem:[#allocation47_spill]]  ;;  %s856_s5 = scalar_lea.vmem [#allocation31], %s3992_s10 }
 0x251   : > { %v1291_v1 = vsel %vm1124_vm3, %v1286_v63, 0  ;;  %s1966_s8 = sshll.u32 %s856_s5, 4  ;;  %s4351_s2 = sld [smem:[#allocation66_spill]]  ;;  %s4187_s8 = int_to_ptr.vmem [resolvable:$true] %s1966_s8 }
 0x252   : > { %s1952_s30 = scalar_lea.sflag [#allocation4], %s3989_s9  ;;  %s3259_s20 = scalar_lea.vmem %s4187_s8, 128 }
 0x253   : > { %2359 = vmatpush3.bf16.msra.mxu1 %v2716_v2  ;;  %p3260_p3 = scmp.ne.s32.totalorder %s4187_s8, %s3259_s20  ;;  %p4352_p12 = scmp.ne.s32.totalorder %s4321_s18, 0 }
 0x254   : > { %2364 = vmatprep.subr.bf16.mxu1 %v3403_v0  ;;  %s3408_s10 = smov [#allocation31]  }
 0x255   : > { %p3261_p6 = pnand %p3260_p3, %p4352_p12  ;;  %s3263_s6 = sshll.u32 %s3408_s10, 4  ;;  %s3264_s6 = int_to_ptr.vmem [resolvable:$false] %s3263_s6 }
 0x256   : > { %2361 = vmatmul.mubr.msk.bf16.vlgmr.msra.gmra.mrb[0].mxu1 %vm884_vm1, %v860_v5  ;;  %s2308_s29 = sshll.u32 %s4350_s28, 7  ;;  %s3265_s7 = scalar_lea.vmem %s3264_s6, 256 }
 0x257   : > { %2365 = vmatpush3.bf16.msra.mxu1 %v2717_v4  ;;  %2368 = vmatprep.mubr.msk.bf16.mxu1 %vm3404_vm0, %v3403_v0  ;;  %s4185_s11 = scalar_lea.hbm %s4351_s2, %s2308_s29  ;;  %p3262_p13 = pneg %p3261_p6 }
 0x258   : > { %2366 = vmatprep.subr.bf16.mxu1 %v3403_v0  ;;  %p3266_p4 = scmp.lt.s32.totalorder %s4187_s8, %s3264_s6  ;;  %p3267_p9 = scmp.lt.s32.totalorder %s3265_s7, %s3259_s20 }
 0x25a   : > { %p3268_p0 = por %p3267_p9, %p3266_p4 }
 0x25b   : > { %2367 = vmatpush3.bf16.msra.mxu1 %v2718_v6 }
 0x25c   : > { %2372 = vmatprep.subr.bf16.mxu1 %v3403_v0  ;;  %p3269_p7 = pnand %p3268_p0, %p3262_p13 }
 0x25e   : > { %2369 = vmatmul.mubr.msk.bf16.vlgmr.msra.gmra.mrb[4].mxu1 %vm884_vm1, %v928_v8 }
 0x25f   : > { %2376 = vmatprep.mubr.msk.bf16.mxu1 %vm3404_vm0, %v3403_v0  ;;  %2373 = vmatpush3.bf16.msra.mxu1 %v2719_v9 }
 0x260   : > { %2374 = vmatprep.subr.bf16.mxu1 %v3403_v0 }
 0x263   : > { %2375 = vmatpush3.bf16.msra.mxu1 %v2720_v10  ;;  %v1337_v10 = vsel %vm1124_vm3, %v1169_v7, 0 }
 0x264   : > { %2380 = vmatprep.subr.bf16.mxu1 %v3403_v0 }
 0x266   : > { %2377 = vmatmul.mubr.msk.bf16.vlgmr.msra.gmra.mrb[8].mxu1 %vm884_vm1, %v928_v8 }
 0x267   : > { %2382 = vmatprep.mubr.msk.bf16.mxu1 %vm3404_vm0, %v3403_v0 }
 0x329   : > { %v922_v11 = vpop.f32.mrb[0].mxu1 }
 0x32a   : > { %v2362_v12 = vpop.f32.mrb[1].mxu1  ;;  %v923_v21 = vadd.f32 %v2265_v16, %v922_v11 }
 0x32b   : > { %v925_v13 = vpop.f32.mrb[2].mxu1 }
 0x32c   : > { %v2363_v14 = vpop.f32.mrb[3].mxu1  ;;  %v4077_v25 = vpack.c.bf16 %v923_v21, %v923_v21 }
 0x331   : > { %v989_v17 = vpop.f32.mrb[4].mxu1 }
 0x332   : > { %v990_v18 = vadd.f32 %v2269_v15, %v989_v17  ;;  %v2370_v19 = vpop.f32.mrb[5].mxu1 }
 0x333   : > { %v992_v20 = vpop.f32.mrb[6].mxu1 }
 0x334   : > { %v4071_v22 = vpack.c.bf16 %v990_v18, %v990_v18  ;;  %v2371_v23 = vpop.f32.mrb[7].mxu1 }
 0x336   : > { %1174 = vrot.lane.b32.xlu0 %v4071_v22, %s3405_s0  ;;  %v1066_v24 = vsel %vm1061_vm2, %v4071_v22, 0 }
 0x337   : > { %2381 = vmatpush3.bf16.xpose.msra.mxu1 %v1066_v24 }
 0x338   : > { %2392 = vmatprep.subr.bf16.mxu1 %v3403_v0 }
 0x339   : > { %v1052_v26 = vpop.f32.mrb[8].mxu1 }
 0x33a   : > { %1171 = vrot.lane.b32.xlu0 %v4077_v25, %s3405_s0  ;;  %v2378_v27 = vpop.f32.mrb[9].mxu1  ;;  %v1053_v31 = vadd.f32 %v2273_v30, %v1052_v26 }
 0x33b   : > { %v1055_v28 = vpop.f32.mrb[10].mxu1 }
 0x33c   : > { %v2379_v29 = vpop.f32.mrb[11].mxu1  ;;  %v4086_v32 = vpack.c.bf16 %v1053_v31, %v1053_v31 }
 0x33e   : > { %2383 = vmatmul.mubr.msk.bf16.vlgmr.msra.gmra.mrb[12].mxu1 %vm1061_vm2, %v4077_v25  ;;  %v1126_v33 = vsel %vm1124_vm3, %v4086_v32, 0 }
 0x33f   : > { %2394 = vmatprep.mubr.msk.bf16.mxu1 %vm3404_vm0, %v3403_v0  ;;  %2387 = vmatpush3.bf16.msra.mxu0 %v1126_v33 }
 0x340   : > { %2398 = vmatprep.subr.bf16.mxu0 %v3403_v0 }
 0x3a8   : > { %v1175_v34 = vpop.permute.xlu0 %1174 }
 0x3a9   : > { %v1180_v35 = vsel %vm1061_vm2, %v1175_v34, 0 }
 0x3aa   : > { %2393 = vmatpush3.bf16.xpose.msra.mxu1 %v1180_v35 }
 0x3ab   : > { %2404 = vmatprep.subr.bf16.mxu1 %v3403_v0 }
 0x3ac   : > { %v1172_v36 = vpop.permute.xlu0 %1171 }
 0x3b1   : > { %2395 = vmatmul.mubr.msk.bf16.vlgmr.msra.gmra.mrb[16].mxu1 %vm1061_vm2, %v1172_v36 }
 0x3b2   : > { %2406 = vmatprep.mubr.msk.bf16.mxu1 %vm3404_vm0, %v3403_v0  ;;  %2405 = vmatpush3.bf16.msra.mxu1 %v1291_v1 }
 0x3b3   : > { %2416 = vmatprep.subr.bf16.mxu1 %v3403_v0 }
 0x411   : > { %v1102_v37 = vpop.f32.mrb[12].mxu1 }
 0x412   : > { %v1108_v38 = vmul.f32 0.35355338, %v1102_v37  ;;  %v2384_v39 = vpop.f32.mrb[13].mxu1 }
 0x413   : > { %v1105_v40 = vpop.f32.mrb[14].mxu1 }
 0x414   : > { %v2385_v41 = vpop.f32.mrb[15].mxu1  ;;  %v1109_v42 = vsel %vm1061_vm2, %v1108_v38, -inf }
 0x415   : > { %1110 = vmax.xlane.f32.xlu1 %v1109_v42 }
 0x484   : > { %v1216_v43 = vpop.f32.mrb[16].mxu1 }
 0x485   : > { %v1222_v44 = vmul.f32 0.35355338, %v1216_v43  ;;  %v2396_v45 = vpop.f32.mrb[17].mxu1 }
 0x486   : > { %v1219_v46 = vpop.f32.mrb[18].mxu1 }
 0x487   : > { %v2397_v47 = vpop.f32.mrb[19].mxu1  ;;  %v1223_v48 = vsel %vm1061_vm2, %v1222_v44, -inf }
 0x488   : > { %1224 = vmax.xlane.f32.xlu1 %v1223_v48 }
 0x4a2   : > { %v1111_v49 = vpop.xlane.xlu1 %1110 }
 0x4a3   : > { %v1112_v50 = vsub.f32 %v1108_v38, %v1111_v49 }
 0x4a5   : > { %v1113_v51 = vmul.f32 1.442695, %v1112_v50 }
 0x4a7   : > { %2731 = vpow2.f32 %v1113_v51 }
 0x4b1   : > { %v2732_v52 = vpop.eup %2731 }
 0x4b2   : > { %v1115_v53 = vsel %vm1061_vm2, %v2732_v52, 0.0 }
 0x4b3   : > { %1116 = vadd.xlane.f32.xlu0 %v1115_v53 }
 0x4c9   : > { %1442 = vrot.lane.b32.xlu0 %v4086_v32, %s3406_s19 }
 0x515   : > { %v1225_v54 = vpop.xlane.xlu1 %1224 }
 0x516   : > { %v1226_v55 = vsub.f32 %v1222_v44, %v1225_v54 }
 0x518   : > { %v1227_v56 = vmul.f32 1.442695, %v1226_v55 }
 0x51a   : > { %2733 = vpow2.f32 %v1227_v56 }
 0x524   : > { %v2734_v57 = vpop.eup %2733 }
 0x525   : > { %v1229_v58 = vsel %vm1061_vm2, %v2734_v57, 0.0 }
 0x526   : > { %1230 = vadd.xlane.f32.xlu1 %v1229_v58 }
 0x537   : > { %1236 = vrot.lane.b32.xlu1 %v4086_v32, %s3405_s0 }
 0x53b   : > { %1381 = vrot.lane.b32.xlu1 %v4071_v22, %s3406_s19 }
 0x53f   : > { %1379 = vrot.lane.b32.xlu1 %v4077_v25, %s3406_s19 }
 0x540   : > { %v1117_v59 = vpop.xlane.xlu0 %1116 }
 0x541   : > { %2735 = vrcp.f32 %v1117_v59 }
 0x544   : > { %v1443_v11 = vpop.permute.xlu0 %1442 }
 0x545   : > { %v1448_v16 = vsel %vm1124_vm3, %v1443_v11, 0 }
 0x54b   : > { %v2736_v60 = vpop.eup %2735 }
 0x54c   : > { %v1119_v61 = vmul.f32 %v2736_v60, %v2732_v52 }
 0x54e   : > { %v1120_v62 = vpack.c.bf16 %v1119_v61, %v1119_v61 }
 0x550   : > { %2389 = vmatmul.mubr.msk.bf16.vlgmr.msra.gmra.mrb[0].mxu0 %vm1061_vm2, %v1120_v62 }
 0x551   : > { %2400 = vmatprep.mubr.msk.bf16.mxu0 %vm3404_vm0, %v3403_v0 }
 0x5b3   : > { %v1231_v2 = vpop.xlane.xlu1 %1230 }
 0x5b4   : > { %2737 = vrcp.f32 %v1231_v2 }
 0x5b7   : > { %v1237_v4 = vpop.permute.xlu1 %1236 }
 0x5b8   : > { %v1242_v5 = vsel %vm1124_vm3, %v1237_v4, 0 }
 0x5b9   : > { %2399 = vmatpush3.bf16.msra.mxu0 %v1242_v5 }
 0x5ba   : > { %2410 = vmatprep.subr.bf16.mxu0 %v3403_v0 }
 0x5bb   : > { %v1382_v18 = vpop.permute.xlu1 %1381 }
 0x5bc   : > { %v1387_v24 = vsel %vm1061_vm2, %v1382_v18, 0 }
 0x5be   : > { %v2738_v6 = vpop.eup %2737 }
 0x5bf   : > { %v1233_v8 = vmul.f32 %v2738_v6, %v2734_v57  ;;  %v1380_v27 = vpop.permute.xlu1 %1379 }
 0x5c1   : > { %v1234_v9 = vpack.c.bf16 %v1233_v8, %v1233_v8 }
 0x5c3   : > { %2401 = vmatmul.mubr.msk.bf16.vlgmr.msra.gmra.mrb[4].mxu0 %vm1061_vm2, %v1234_v9 }
 0x5c4   : > { %2411 = vmatpush3.bf16.msra.mxu0 %v1337_v10  ;;  %2412 = vmatprep.mubr.msk.bf16.mxu0 %vm3404_vm0, %v3403_v0  ;;  %v1653_v10 = vld [vmem:[#allocation11 + $0xc] sm:$0xf] }
 0x5c5   : > { %2422 = vmatprep.subr.bf16.mxu0 %v3403_v0  ;;  %v1658_v11 = vsel %vm1124_vm3, %v1653_v10, 0 }
 0x623   : > { %v1162_v12 = vpop.f32.mrb[0].mxu0 }
 0x624   : > { %v1168_v13 = vpack.c.bf16 %v1162_v12, %v1162_v12  ;;  %v2390_v14 = vpop.f32.mrb[1].mxu0 }
 0x625   : > { %v1165_v15 = vpop.f32.mrb[2].mxu0 }
 0x626   : > { %v2391_v17 = vpop.f32.mrb[3].mxu0  ;;  %2413 = vmatmul.mubr.msk.bf16.vlgmr.msra.gmra.mrb[8].mxu0 %vm1061_vm2, %v1168_v13 }
 0x627   : > { %2423 = vmatpush3.bf16.msra.mxu0 %v1448_v16  ;;  %2424 = vmatprep.mubr.msk.bf16.mxu0 %vm3404_vm0, %v3403_v0 }
 0x628   : > { %2434 = vmatprep.subr.bf16.mxu0 %v3403_v0 }
 0x696   : > { %v1278_v19 = vpop.f32.mrb[4].mxu0 }
 0x697   : > { %v1284_v20 = vpack.c.bf16 %v1278_v19, %v1278_v19  ;;  %v2402_v21 = vpop.f32.mrb[5].mxu0 }
 0x698   : > { %v1281_v23 = vpop.f32.mrb[6].mxu0 }
 0x699   : > { %v2403_v26 = vpop.f32.mrb[7].mxu0  ;;  %2407 = vmatmul.mubr.msk.bf16.vlgmr.msra.gmra.mrb[20].mxu1 %vm1061_vm2, %v1284_v20 }
 0x69a   : > { %2417 = vmatpush3.bf16.xpose.msra.mxu1 %v1387_v24  ;;  %2418 = vmatprep.mubr.msk.bf16.mxu1 %vm3404_vm0, %v3403_v0 }
 0x69b   : > { %2428 = vmatprep.subr.bf16.mxu1 %v3403_v0 }
 0x6a1   : > { %2419 = vmatmul.mubr.msk.bf16.vlgmr.msra.gmra.mrb[24].mxu1 %vm1061_vm2, %v1380_v27 }
 0x6a2   : > { %2430 = vmatprep.mubr.msk.bf16.mxu1 %vm3404_vm0, %v3403_v0 }
 0x6f9   : > { %v1373_v28 = vpop.f32.mrb[8].mxu0 }
 0x6fa   : > { %v2414_v29 = vpop.f32.mrb[9].mxu0 }
 0x6fb   : > { %v1376_v30 = vpop.f32.mrb[10].mxu0 }
 0x6fc   : > { %v2415_v31 = vpop.f32.mrb[11].mxu0  ;;  %v2289_v30 = vld [vmem:[#allocation20] ss:$0 sm:$0xff] }
 0x76c   : > { %v1327_v33 = vpop.f32.mrb[20].mxu1 }
 0x76d   : > { %v4130_v34 = vadd.f32 %v1373_v28, %v1327_v33  ;;  %v2408_v35 = vpop.f32.mrb[21].mxu1 }
 0x76e   : > { %v1330_v36 = vpop.f32.mrb[22].mxu1 }
 0x76f   : > { %v2409_v37 = vpop.f32.mrb[23].mxu1 }
 0x774   : > { %v1423_v38 = vpop.f32.mrb[24].mxu1 }
 0x775   : > { %v1429_v39 = vmul.f32 0.35355338, %v1423_v38  ;;  %v2420_v40 = vpop.f32.mrb[25].mxu1 }
 0x776   : > { %v1426_v41 = vpop.f32.mrb[26].mxu1 }
 0x777   : > { %v2421_v42 = vpop.f32.mrb[27].mxu1  ;;  %v1430_v43 = vsel %vm1061_vm2, %v1429_v39, -inf }
 0x778   : > { %1431 = vmax.xlane.f32.xlu1 %v1430_v43 }
 0x805   : > { %v1432_v44 = vpop.xlane.xlu1 %1431 }
 0x806   : > { %v1433_v45 = vsub.f32 %v1429_v39, %v1432_v44  ;;  %v2721_v44 = vld [vmem:[#allocation13] sm:$0xff]  }
 0x808   : > { %v1434_v46 = vmul.f32 1.442695, %v1433_v45  ;;  %v2722_v45 = vld [vmem:[#allocation13 + $0x8] sm:$0xff]  }
 0x80a   : > { %2739 = vpow2.f32 %v1434_v46  ;;  %v2723_v46 = vld [vmem:[#allocation14] sm:$0xff]  }
 0x814   : > { %v2740_v47 = vpop.eup %2739 }
 0x815   : > { %v1436_v48 = vsel %vm1061_vm2, %v2740_v47, 0.0 }
 0x816   : > { %1437 = vadd.xlane.f32.xlu0 %v1436_v48  ;;  %v2726_v48 = vld [vmem:[#allocation14 + $0x18] sm:$0xff]  }
 0x82c   : > { %1542 = vrot.lane.b32.xlu0 %v4071_v22, %s3407_s21 }
 0x830   : > { %1540 = vrot.lane.b32.xlu0 %v4077_v25, %s3407_s21  ;;  %v1492_v25 = vld [vmem:[#allocation11 + $0x8] sm:$0xf] }
 0x831   : > { %v1497_v55 = vsel %vm1124_vm3, %v1492_v25, 0 }
 0x832   : > { %2429 = vmatpush3.bf16.msra.mxu1 %v1497_v55  ;;  %v2291_v55 = vld [vmem:[#allocation26] ss:$0 sm:$0xff] }
 0x833   : > { %2440 = vmatprep.subr.bf16.mxu1 %v3403_v0 }
 0x8a3   : > { %v1438_v49 = vpop.xlane.xlu0 %1437 }
 0x8a4   : > { %2741 = vrcp.f32 %v1438_v49  ;;  %v2727_v49 = vld [vmem:[#allocation14 + $0x20] sm:$0xff]  }
 0x8a7   : > { %v1543_v52 = vpop.permute.xlu0 %1542 }
 0x8a8   : > { %v1548_v54 = vsel %vm1061_vm2, %v1543_v52, 0 }
 0x8ab   : > { %v1541_v22 = vpop.permute.xlu0 %1540 }
 0x8ae   : > { %v2742_v50 = vpop.eup %2741 }
 0x8af   : > { %v1440_v51 = vmul.f32 %v2742_v50, %v2740_v47  ;;  %v2724_v47 = vld [vmem:[#allocation14 + $0x8] sm:$0xff]  }
 0x8b0   : > { %v2728_v50 = vld [vmem:[#allocation14 + $0x28] sm:$0xff]  }
 0x8b1   : > { %v1441_v53 = vpack.c.bf16 %v1440_v51, %v1440_v51 }
 0x8b3   : > { %2425 = vmatmul.mubr.msk.bf16.vlgmr.msra.gmra.mrb[12].mxu0 %vm1061_vm2, %v1441_v53 }
 0x8b4   : > { %2435 = vmatpush3.bf16.xpose.msra.mxu0 %v1548_v54  ;;  %2436 = vmatprep.mubr.msk.bf16.mxu0 %vm3404_vm0, %v3403_v0 }
 0x8b5   : > { %2446 = vmatprep.subr.bf16.mxu0 %v3403_v0 }
 0x8bb   : > { %2437 = vmatmul.mubr.msk.bf16.vlgmr.msra.gmra.mrb[16].mxu0 %vm1061_vm2, %v1541_v22  ;;  %v2290_v22 = vld [vmem:[#allocation25] ss:$0 sm:$0xff] }
 0x8bc   : > { %2448 = vmatprep.mubr.msk.bf16.mxu0 %vm3404_vm0, %v3403_v0  ;;  %2447 = vmatpush3.bf16.msra.mxu0 %v1658_v11 }
 0x8bd   : > { %2460 = vmatprep.subr.bf16.mxu0 %v3403_v0 }
 0x986   : > { %v1484_v56 = vpop.f32.mrb[12].mxu0 }
 0x987   : > { %v1490_v57 = vpack.c.bf16 %v1484_v56, %v1484_v56  ;;  %v2426_v58 = vpop.f32.mrb[13].mxu0 }
 0x988   : > { %v1487_v59 = vpop.f32.mrb[14].mxu0 }
 0x989   : > { %v2427_v60 = vpop.f32.mrb[15].mxu0  ;;  %2431 = vmatmul.mubr.msk.bf16.vlgmr.msra.gmra.mrb[28].mxu1 %vm1061_vm2, %v1490_v57  ;;  %v2729_v59 = vld [vmem:[#allocation14 + $0x30] sm:$0xff]  }
 0x98a   : > { %2442 = vmatprep.mubr.msk.bf16.mxu1 %vm3404_vm0, %v3403_v0  ;;  %v2730_v60 = vld [vmem:[#allocation14 + $0x38] sm:$0xff]  }
 0x98e   : > { %v1584_v61 = vpop.f32.mrb[16].mxu0 }
 0x98f   : > { %v1590_v62 = vmul.f32 0.35355338, %v1584_v61  ;;  %v2438_v63 = vpop.f32.mrb[17].mxu0  ;;  %v2292_v61 = vld [vmem:[#allocation22] ss:$0 sm:$0xff] }
 0x990   : > { %v1587_v1 = vpop.f32.mrb[18].mxu0 }
 0x991   : > { %v2439_v2 = vpop.f32.mrb[19].mxu0  ;;  %v1591_v4 = vsel %vm1061_vm2, %v1590_v62, -inf }
 0x992   : > { %1592 = vmax.xlane.f32.xlu0 %v1591_v4 }
 0xa1f   : > { %v1593_v5 = vpop.xlane.xlu0 %1592 }
 0xa20   : > { %v1594_v6 = vsub.f32 %v1590_v62, %v1593_v5 }
 0xa22   : > { %v1595_v7 = vmul.f32 1.442695, %v1594_v6 }
 0xa24   : > { %2743 = vpow2.f32 %v1595_v7  ;;  %v2296_v7 = vld [vmem:[#allocation23] ss:$0 sm:$0xff] }
 0xa2e   : > { %v2744_v8 = vpop.eup %2743 }
 0xa2f   : > { %v1597_v9 = vsel %vm1061_vm2, %v2744_v8, 0.0 }
 0xa30   : > { %1598 = vadd.xlane.f32.xlu1 %v1597_v9 }
 0xa41   : > { %1603 = vrot.lane.b32.xlu1 %v4086_v32, %s3407_s21 }
 0xa5c   : > { %v1533_v12 = vpop.f32.mrb[28].mxu1 }
 0xa5d   : > { %v1539_v13 = vadd.f32 %v1533_v12, %v4130_v34  ;;  %v2432_v14 = vpop.f32.mrb[29].mxu1 }
 0xa5e   : > { %v1536_v15 = vpop.f32.mrb[30].mxu1 }
 0xa5f   : > { %v2433_v16 = vpop.f32.mrb[31].mxu1 }
 0xabd   : > { %v1599_v17 = vpop.xlane.xlu1 %1598 }
 0xabe   : > { %2745 = vrcp.f32 %v1599_v17 }
 0xac1   : > { %v1604_v18 = vpop.permute.xlu1 %1603 }
 0xac2   : > { %v1609_v19 = vsel %vm1124_vm3, %v1604_v18, 0 }
 0xac3   : > { %2441 = vmatpush3.bf16.msra.mxu1 %v1609_v19 }
 0xac4   : > { %2452 = vmatprep.subr.bf16.mxu1 %v3403_v0 }
 0xac8   : > { %v2746_v32 = vpop.eup %2745 }
 0xac9   : > { %v1601_v20 = vmul.f32 %v2746_v32, %v2744_v8 }
 0xacb   : > { %v1602_v21 = vpack.c.bf16 %v1601_v20, %v1601_v20 }
 0xacd   : > { %2443 = vmatmul.mubr.msk.bf16.vlgmr.msra.gmra.mrb[32].mxu1 %vm1061_vm2, %v1602_v21 }
 0xace   : > { %2456 = vmatprep.mubr.msk.bf16.mxu1 %vm3404_vm0, %v3403_v0  ;;  %2453 = vmatpush3.bf16.msra.mxu1 %v2721_v44 }
 0xacf   : > { %2454 = vmatprep.subr.bf16.mxu1 %v3403_v0 }
 0xad2   : > { %2455 = vmatpush3.bf16.msra.mxu1 %v2722_v45 }
 0xba0   : > { %v1645_v23 = vpop.f32.mrb[32].mxu1 }
 0xba1   : > { %v1651_v24 = vpack.c.bf16 %v1645_v23, %v1645_v23  ;;  %v2444_v26 = vpop.f32.mrb[33].mxu1  ;;  %v2305_v23 = vld [vmem:[#allocation28] ss:$0 sm:$0xff] }
 0xba2   : > { %v1648_v27 = vpop.f32.mrb[34].mxu1  ;;  %v2306_v26 = vld [vmem:[#allocation29] ss:$0 sm:$0xff] }
 0xba3   : > { %v2445_v28 = vpop.f32.mrb[35].mxu1  ;;  %2449 = vmatmul.mubr.msk.bf16.vlgmr.msra.gmra.mrb[20].mxu0 %vm1061_vm2, %v1651_v24 }
 0xba4   : > { %2476 = vmatprep.mubr.msk.bf16.mxu0 %vm3404_vm0, %v3403_v0  ;;  %2461 = vmatpush3.bf16.msra.mxu0 %v2723_v46 }
 0xba5   : > { %2462 = vmatprep.subr.bf16.mxu0 %v3403_v0 }
 0xba8   : > { %2463 = vmatpush3.bf16.msra.mxu0 %v2724_v47 }
 0xba9   : > { %2464 = vmatprep.subr.bf16.mxu0 %v3403_v0 }
 0xc76   : > { %v1694_v29 = vpop.f32.mrb[20].mxu0 }
 0xc77   : > { %v1700_v31 = vadd.f32 %v1694_v29, %v1539_v13  ;;  %v2450_v33 = vpop.f32.mrb[21].mxu0 }
 0xc78   : > { %v1697_v34 = vpop.f32.mrb[22].mxu0 }
 0xc79   : > { %v1708_v35 = vadd.f32 %v2289_v30, %v1700_v31  ;;  %v2451_v36 = vpop.f32.mrb[23].mxu0 }
 0xc7b   : > { %v1709_v37 = vadd.f32 %v1708_v35, %v4050_v3  ;;  %v2725_v3 = vld [vmem:[#allocation14 + $0x10] sm:$0xff]  }
 0xc7c   : > { %2465 = vmatpush3.bf16.msra.mxu0 %v2725_v3 }
 0xc7d   : > { %v1712_v38 = vsel %vm884_vm1, %v1709_v37, 0.0  ;;  %2466 = vmatprep.subr.bf16.mxu0 %v3403_v0 }
 0xc7e   : > { %1713 = vadd.xlane.f32.xlu1 %v1712_v38 }
 0xc80   : > { %2467 = vmatpush3.bf16.msra.mxu0 %v2726_v48 }
 0xc81   : > { %2468 = vmatprep.subr.bf16.mxu0 %v3403_v0 }
 0xc84   : > { %2469 = vmatpush3.bf16.msra.mxu0 %v2727_v49 }
 0xc85   : > { %2470 = vmatprep.subr.bf16.mxu0 %v3403_v0 }
 0xc88   : > { %2471 = vmatpush3.bf16.msra.mxu0 %v2728_v50 }
 0xc89   : > { %2472 = vmatprep.subr.bf16.mxu0 %v3403_v0 }
 0xc8c   : > { %2473 = vmatpush3.bf16.msra.mxu0 %v2729_v59 }
 0xc8d   : > { %2474 = vmatprep.subr.bf16.mxu0 %v3403_v0 }
 0xc90   : > { %2475 = vmatpush3.bf16.msra.mxu0 %v2730_v60 }
 0xd0b   : > { %v1714_v39 = vpop.xlane.xlu1 %1713 }
 0xd0c   : > { %v1716_v40 = vmul.f32 0.03125, %v1714_v39 }
 0xd0e   : > { %v1717_v41 = vsub.f32 %v1709_v37, %v1716_v40 }
 0xd10   : > { %v1718_v42 = vmul.f32 %v1717_v41, %v1717_v41 }
 0xd12   : > { %v1719_v43 = vsel %vm884_vm1, %v1718_v42, 0.0 }
 0xd13   : > { %1720 = vadd.xlane.f32.xlu0 %v1719_v43 }
 0xda0   : > { %v1721_v51 = vpop.xlane.xlu0 %1720 }
 0xda1   : > { %v1722_v52 = vmul.f32 0.03125, %v1721_v51 }
 0xda3   : > { %v1723_v53 = vadd.f32 1e-05, %v1722_v52 }
 0xda5   : > { %2747 = vrsqrt.f32 %v1723_v53 }
 0xdaf   : > { %v2748_v54 = vpop.eup %2747 }
 0xdb0   : > { %v1725_v25 = vmul.f32 %v2748_v54, %v1717_v41 }
 0xdb2   : > { %v1732_v56 = vmul.f32 %v2290_v22, %v1725_v25 }
 0xdb4   : > { %v1739_v57 = vadd.f32 %v2291_v55, %v1732_v56 }
 0xdb6   : > { %v1740_v58 = vpack.c.bf16 %v1739_v57, %v1739_v57 }
 0xdb8   : > { %2457 = vmatmul.mubr.msk.bf16.vlgmr.msra.gmra.mrb[36].mxu1 %vm884_vm1, %v1740_v58 }
 0xe8b   : > { %v1801_v62 = vpop.f32.mrb[36].mxu1 }
 0xe8c   : > { %v1802_v63 = vadd.f32 %v2292_v61, %v1801_v62  ;;  %v2458_v1 = vpop.f32.mrb[37].mxu1 }
 0xe8d   : > { %v1804_v2 = vpop.f32.mrb[38].mxu1 }
 0xe8e   : > { %v1807_v4 = vmax.f32 %v1802_v63, 0.0  ;;  %v2459_v5 = vpop.f32.mrb[39].mxu1 }
 0xe90   : > { %v1808_v6 = vpack.c.bf16 %v1807_v4, %v1807_v4 }
 0xe92   : > { %2477 = vmatmul.mubr.bf16.vlgmr.msra.gmra.mrb[24].mxu0 %v1808_v6 }
 0xf65   : > { %v1914_v8 = vpop.f32.mrb[24].mxu0 }
 0xf66   : > { %v1915_v9 = vadd.f32 %v2296_v7, %v1914_v8  ;;  %v2478_v10 = vpop.f32.mrb[25].mxu0 }
 0xf67   : > { %v1917_v11 = vpop.f32.mrb[26].mxu0 }
 0xf68   : > { %v2479_v12 = vpop.f32.mrb[27].mxu0  ;;  %v1920_v13 = vadd.f32 %v1915_v9, %v1739_v57 }
 0xf6a   : > { %v1923_v0 = vsel %vm884_vm1, %v1920_v13, 0.0 }
 0xf6b   : > { %1924 = vadd.xlane.f32.xlu0 %v1923_v0 }
 0xff8   : > { %v1925_v14 = vpop.xlane.xlu0 %1924 }
 0xff9   : > { %v1926_v15 = vmul.f32 0.03125, %v1925_v14 }
 0xffb   : > { %v1927_v16 = vsub.f32 %v1920_v13, %v1926_v15 }
 0xffd   : > { %v1928_v17 = vmul.f32 %v1927_v16, %v1927_v16 }
 0xfff   : > { %v1929_v18 = vsel %vm884_vm1, %v1928_v17, 0.0 }
0x1000   : > { %1930 = vadd.xlane.f32.xlu0 %v1929_v18 }
0x108d   : > { %v1931_v19 = vpop.xlane.xlu0 %1930 }
0x108e   : > { %v1932_v32 = vmul.f32 0.03125, %v1931_v19 }
0x1090   : > { %v1933_v20 = vadd.f32 1e-05, %v1932_v32 }
0x1092   : > { %2749 = vrsqrt.f32 %v1933_v20 }
0x109c   : > { %v2750_v21 = vpop.eup %2749 }
0x109d   : > { %v1935_v24 = vmul.f32 %v2750_v21, %v1927_v16 }
0x109f   : > { %v1942_v27 = vmul.f32 %v2305_v23, %v1935_v24 }
0x10a1   : > { %v1949_v28 = vadd.f32 %v2306_v26, %v1942_v27 }
0x10a3   : > { %1950 = vst.msk [vmem:[%s856_s5] sm:$0xff] %vm884_vm1, %v1949_v28 }
0x10a4   : > { %3272 = shalt.err (!%p3269_p7)
}
0x10a5   : > { %s3273_s9 = scalar_lea.hbm %s4185_s11, 128  ;;  %s3277_s0 = scalar_lea.hbm %s4351_s2, 256 }
0x10a6   : > { %p3274_p11 = scmp.ne.s32.totalorder %s4185_s11, %s3273_s9  ;;  %p3278_p1 = scmp.lt.u32.totalorder %s4185_s11, %s4351_s2 }
0x10a7   : > { %p3279_p5 = scmp.lt.u32.totalorder %s3277_s0, %s3273_s9  ;;  %p3281_p3 = scmp.lt.u32.totalorder %s3273_s9, %s4185_s11 }
0x10a8   : > { %p3275_p2 = pnand %p3274_p11, %p4352_p12 }
0x10a9   : > { %p3280_p8 = por %p3279_p5, %p3278_p1 }
0x10aa   : > { %p3276_p10 = pneg %p3275_p2 }
0x10ab   : > { %p3282_p6 = por %p3281_p3, %p3280_p8 }
0x10ad   : > { %p3283_p13 = pnand %p3282_p6, %p3276_p10 }
0x10af   : > { %3286 = shalt.err (!%p3283_p13)
}
0x10b0   : > { %2548 = dma.vmem_to_hbm [thread:$0]  (%p4352_p12), %s4187_s8, 128, %s4185_s11, %s1952_s30  }
0x10b1 PF: > { %s4353_s28 = sld [smem:[#allocation44_spill]]  ;;  %s4354_s29 = sld [smem:[#allocation49_spill]] }
0x10b2   : > { %p4355_p4 = scmp.ne.s32.totalorder %s4322_s27, 0 }
0x10b7   : > { %s1978_s5 = sand.u32 1, %s4353_s28   ;;  %p4356_p9 = scmp.ge.s32.totalorder %s4354_s29, 2 }
0x10b8   : > { %s1979_s22 = scalar_lea.sflag [#allocation4], %s1978_s5 }
0x10b9   : > { %p2607_p0 = pnand %p4356_p9, %p4355_p4 }
0x10bb   : > { %3356 = dma.done.wait (!%p2607_p0), %s1979_s22, 128  }
0x10bc   : > { %3358 = vsyncadd (!%p2607_p0), %s1979_s22, 4294967168  ;;  %s45_s19 = sadd.s32 1, %s4354_s29   ;;  %s4357_s27 = sld [smem:[#allocation45_spill]] }
0x10bd   : > { %p42_p7 = scmp.ge.s32.totalorder %s45_s19, 4   ;;  %s4358_s28 = sld [smem:[#allocation46_spill]] }
0x10be   : > { %s4359_s30 = sld [smem:[#allocation48_spill]]  ;;  %s4360_s29 = smov %s3910_s3 }
0x10bf   : > { %s4361_s0 = smov %s4363_s26  ;;  %44 = sbr.rel (!%p42_p7) target bundleno = 32 (0x20), region = 217 }
0x10c6   :  { %1984 = vsyncpa [#allocation3], 1 }
0x10c7   :  { %1986 = vsyncpa [#allocation3 + $0x1], 1 }
0x10c8   :  { %1987 = vsyncpa [#allocation6], 1 }
0x10c9   :  { %1989 = vsyncpa [#allocation6 + $0x1], 1 }
0x10ca   :  { %1990 = vsyncpa [#allocation9], 1 }
0x10cb   :  { %1991 = vsyncpa [#allocation12], 1 }
0x10cc   :  { %1992 = vsyncpa [#allocation15], 1 }
0x10cd   :  { %1993 = vsyncpa [#allocation18], 1 }
0x10ce   :  { %1994 = vsyncpa [#allocation21], 1 }
0x10cf   :  { %1995 = vsyncpa [#allocation24], 1 }
0x10d0   :  { %1996 = vsyncpa [#allocation27], 1 }
0x10d1   :  { %1997 = vsyncpa [#allocation30], 1 }
0x10d2   :  { %1998 = vsyncpa [#allocation4], 1 }
0x10d3   :  { %2000 = vsyncpa [#allocation4 + $0x1], 1 }

</bundles_post_ra>
